<compile_context>
chip_gen: v5e
topology: v5e:2x2
jax: 0.10.0
libtpu: 0.0.40
codegen_flags: <defaults>
</compile_context>

<pallas_src>
import functools

import jax
import jax.numpy as jnp
from jax import lax
from jax.experimental import pallas as pl
from jax.experimental.pallas import tpu as pltpu

K = 9                 # Conv1d kernel size
PAD = (K - 1) // 2    # = 4 ('same' padding)
K_PAD = 16            # taps padded to 2 sublane tiles; extra taps have zero weight
BN_EPS = 1e-5


def _resnet_kernel(xw_ref, wt_ref, gamma_ref, beta_ref, out_ref,
                   ssum_ref, ssq_ref, *, n_batch, t_len, t_tile):
    # xw_ref:    (1, 1, 2, W)  pre-split avg-pool pairs for this (batch, tile)
    #                          window, W = t_tile + K_PAD (zero-padded halo)
    # wt_ref:    (F, K_PAD)    conv weight, wt[f, k] == torch_weight[f, 0, k]
    # gamma_ref: (F, 1)        BN scale        beta_ref: (F, 1) BN shift
    # out_ref:   (F, B)        resident output accumulator (transposed outside)
    # ssum_ref / ssq_ref: (F, 1) persistent BN statistics accumulators
    phase = pl.program_id(0)
    b = pl.program_id(1)
    i = pl.program_id(2)

    # ---- avg_pool1d(k=2, s=2): even/odd rows of the window, lane-dense T ----
    xw = xw_ref[...]                                          # (1, 1, 2, W)
    win = 0.5 * (xw[0, 0, 0:1, :] + xw[0, 0, 1:2, :])         # (1, W)

    # ---- Conv1d as im2col^T @ weight^T on the MXU ----
    # rows are static lane shifts of the pooled window (XLU work, co-issues)
    cols_t = jnp.concatenate(
        [win[:, k:k + t_tile] for k in range(K_PAD)], axis=0)  # (K_PAD, T_TILE)
    z_t = jnp.dot(wt_ref[...], cols_t,
                  preferred_element_type=jnp.float32)          # (F, T_TILE)

    # ---- phase 0: accumulate BN training-mode batch statistics ----
    @pl.when((phase == 0) & (b == 0) & (i == 0))
    def _init_stats():
        ssum_ref[...] = jnp.zeros_like(ssum_ref)
        ssq_ref[...] = jnp.zeros_like(ssq_ref)

    @pl.when(phase == 0)
    def _stats():
        ssum_ref[...] += jnp.sum(z_t, axis=1, keepdims=True)
        ssq_ref[...] += jnp.sum(z_t * z_t, axis=1, keepdims=True)

    # ---- phase 1: fused normalize + affine + ReLU + length-mean ----
    @pl.when((phase == 1) & (b == 0) & (i == 0))
    def _init_out():
        out_ref[...] = jnp.zeros_like(out_ref)

    @pl.when(phase == 1)
    def _normalize():
        inv_n = 1.0 / float(n_batch * t_len)
        mu = ssum_ref[...] * inv_n                             # (F, 1)
        # NOTE: E[x^2]-E[x]^2 with f32 accumulation (fine at BN activation
        # scales; the two-pass form is safer only for huge-mean activations).
        var = ssq_ref[...] * inv_n - mu * mu
        scale = gamma_ref[...] * lax.rsqrt(var + BN_EPS)       # (F, 1)
        shift = beta_ref[...] - mu * scale
        y = jnp.maximum(z_t * scale + shift, 0.0)              # (F, T_TILE)
        part = jnp.sum(y, axis=1, keepdims=True) * (1.0 / float(t_len))
        col = lax.broadcasted_iota(jnp.int32, out_ref.shape, 1)
        out_ref[...] += jnp.where(col == b, part, 0.0)         # add column b


def resnet_forward(x, w_fk, gamma, beta, *, t_tile=128):
    """x: (B, 1, L) f32; w_fk: (F, K) torch Conv1d weight[:, 0, :];
    gamma/beta: (F,).  Returns (B, F) f32 == ResNet.forward(x)."""
    B, C, L = x.shape
    assert C == 1, "ResNet embed expects a single input channel"
    assert L % 2 == 0
    T = L // 2
    F, k_w = w_fk.shape
    assert k_w == K
    assert T % t_tile == 0, "pick t_tile dividing the pooled length"
    NT = T // t_tile
    W = t_tile + K_PAD

    x = x.astype(jnp.float32)
    # Layout plumbing only: split avg-pool pairs so the pooled length axis is
    # lane-dense, zero-pad for the 'same' conv (+ zero tail for dummy taps),
    # and cut overlapping per-tile windows so every grid step is a plain
    # rectangular BlockSpec DMA.
    x_eo = x.reshape(B, T, 2).transpose(0, 2, 1)                    # (B, 2, T)
    x_eo = jnp.pad(x_eo, ((0, 0), (0, 0), (PAD, K_PAD - PAD)))      # (B, 2, T+K_PAD)
    x_win = jnp.stack(
        [x_eo[:, :, i * t_tile:i * t_tile + W] for i in range(NT)],
        axis=0)                                                     # (NT, B, 2, W)

    wt = jnp.zeros((F, K_PAD), jnp.float32).at[:, :K].set(w_fk.astype(jnp.float32))
    gamma2 = gamma.reshape(F, 1).astype(jnp.float32)
    beta2 = beta.reshape(F, 1).astype(jnp.float32)

    kernel = functools.partial(_resnet_kernel, n_batch=B, t_len=T, t_tile=t_tile)

    out_fb = pl.pallas_call(
        kernel,
        out_shape=jax.ShapeDtypeStruct((F, B), jnp.float32),
        grid=(2, B, NT),                          # (phase, batch, T-tile)
        in_specs=[
            pl.BlockSpec((1, 1, 2, W), lambda p, b, i: (i, b, 0, 0)),
            pl.BlockSpec((F, K_PAD), lambda p, b, i: (0, 0)),
            pl.BlockSpec((F, 1), lambda p, b, i: (0, 0)),
            pl.BlockSpec((F, 1), lambda p, b, i: (0, 0)),
        ],
        out_specs=pl.BlockSpec((F, B), lambda p, b, i: (0, 0)),
        scratch_shapes=[
            pltpu.VMEM((F, 1), jnp.float32),      # running per-feature sum
            pltpu.VMEM((F, 1), jnp.float32),      # running per-feature sum-of-squares
        ],
        compiler_params=pltpu.CompilerParams(
            dimension_semantics=("arbitrary", "arbitrary", "arbitrary"),
            vmem_limit_bytes=32 * 1024 * 1024,
        ),
    )(x_win, wt, gamma2, beta2)

    return out_fb.T                                                 # (B, F)


def resnet_reference(x, w_fk, gamma, beta):
    """Pure-JAX reference of the same forward pass."""
    B, _, L = x.shape
    T = L // 2
    F, k_w = w_fk.shape
    pooled = x.reshape(B, T, 2).mean(axis=-1)                       # avg_pool1d(2)
    padded = jnp.pad(pooled, ((0, 0), (PAD, PAD)))
    cols = jnp.stack([padded[:, k:k + T] for k in range(k_w)], axis=-1)  # (B,T,K)
    z = jnp.einsum("btk,fk->btf", cols, w_fk,
                   precision=jax.lax.Precision.HIGHEST)             # conv1d
    mu = z.mean(axis=(0, 1), keepdims=True)
    var = ((z - mu) ** 2).mean(axis=(0, 1), keepdims=True)
    y = (z - mu) * jax.lax.rsqrt(var + BN_EPS)
    y = y * gamma.reshape(1, 1, F) + beta.reshape(1, 1, F)
    y = jnp.maximum(y, 0.0)
    return y.mean(axis=1)                                           # (B, F)


if __name__ == "__main__":
    # small shapes consistent with the module's forward
    B, L = 4, 512            # input (batch, 1 channel, length) -> T = 256 pooled
    F = 128                  # featureMaps (lane-dense feature axis)

    key = jax.random.PRNGKey(0)
    kx, kw = jax.random.split(key)

    x = jax.random.normal(kx, (B, 1, L), dtype=jnp.float32)
    # torch Conv1d(1, F, 9).weight has shape (F, 1, K); keep it flattened (F, K).
    w_fk = jax.random.normal(kw, (F, K), dtype=jnp.float32) * (2.0 / K) ** 0.5
    # BatchNorm1d default affine params
    gamma = jnp.ones((F,), dtype=jnp.float32)
    beta = jnp.zeros((F,), dtype=jnp.float32)

    out = jax.block_until_ready(resnet_forward(x, w_fk, gamma, beta, t_tile=128))
    ref = resnet_reference(x, w_fk, gamma, beta)

    assert out.shape == (B, F)
    err = float(jnp.max(jnp.abs(out - ref)))
    assert jnp.allclose(out, ref, atol=1e-3, rtol=1e-3), f"mismatch, max |err|={err}"

    print("KERNEL_OK")
</pallas_src>

<mosaic_0001>
module attributes {stable_mosaic.version = 11 : i64} {
  func.func @_resnet_kernel(%arg0: i32, %arg1: i32, %arg2: i32, %arg3: memref<1x1x2x144xf32, #tpu.memory_space<vmem>>, %arg4: memref<128x16xf32, #tpu.memory_space<vmem>>, %arg5: memref<128x1xf32, #tpu.memory_space<vmem>>, %arg6: memref<128x1xf32, #tpu.memory_space<vmem>>, %arg7: memref<128x4xf32, #tpu.memory_space<vmem>>, %arg8: memref<128x1xf32, #tpu.memory_space<vmem>>, %arg9: memref<128x1xf32, #tpu.memory_space<vmem>>) attributes {dimension_semantics = [#tpu.dimension_semantics<arbitrary>, #tpu.dimension_semantics<arbitrary>, #tpu.dimension_semantics<arbitrary>], iteration_bounds = array<i64: 2, 4, 2>, scalar_prefetch = 0 : i64, scratch_operands = 2 : i64, tpu.core_type = #tpu.core_type<tc>, window_params = [{transform_indices = @transform_0, window_bounds = array<i64: 1, 1, 2, 144>}, {pipeline_mode = #tpu.pipeline_mode<synchronous>, transform_indices = @transform_1, window_bounds = array<i64: 128, 16>}, {pipeline_mode = #tpu.pipeline_mode<synchronous>, transform_indices = @transform_2, window_bounds = array<i64: 128, 1>}, {pipeline_mode = #tpu.pipeline_mode<synchronous>, transform_indices = @transform_3, window_bounds = array<i64: 128, 1>}, {pipeline_mode = #tpu.pipeline_mode<synchronous>, transform_indices = @transform_4, window_bounds = array<i64: 128, 4>}]} {
    %c0 = arith.constant 0 : index
    %c0_0 = arith.constant 0 : index
    %c0_1 = arith.constant 0 : index
    %c0_2 = arith.constant 0 : index
    %0 = vector.load %arg3[%c0, %c0_0, %c0_1, %c0_2] : memref<1x1x2x144xf32, #tpu.memory_space<vmem>>, vector<1x1x2x144xf32>
    %1 = vector.extract_strided_slice %0 {offsets = [0, 0, 0, 0], sizes = [1, 1, 1, 144], strides = [1, 1, 1, 1]} : vector<1x1x2x144xf32> to vector<1x1x1x144xf32>
    %2 = vector.shape_cast %1 : vector<1x1x1x144xf32> to vector<1x144xf32>
    %3 = vector.extract_strided_slice %0 {offsets = [0, 0, 1, 0], sizes = [1, 1, 1, 144], strides = [1, 1, 1, 1]} : vector<1x1x2x144xf32> to vector<1x1x1x144xf32>
    %4 = vector.shape_cast %3 : vector<1x1x1x144xf32> to vector<1x144xf32>
    %5 = arith.addf %2, %4 : vector<1x144xf32>
    %cst = arith.constant 5.000000e-01 : f32
    %6 = vector.broadcast %cst : f32 to vector<1x144xf32>
    %7 = arith.mulf %6, %5 : vector<1x144xf32>
    %8 = vector.extract_strided_slice %7 {offsets = [0, 0], sizes = [1, 128], strides = [1, 1]} : vector<1x144xf32> to vector<1x128xf32>
    %9 = vector.extract_strided_slice %7 {offsets = [0, 1], sizes = [1, 128], strides = [1, 1]} : vector<1x144xf32> to vector<1x128xf32>
    %10 = vector.extract_strided_slice %7 {offsets = [0, 2], sizes = [1, 128], strides = [1, 1]} : vector<1x144xf32> to vector<1x128xf32>
    %11 = vector.extract_strided_slice %7 {offsets = [0, 3], sizes = [1, 128], strides = [1, 1]} : vector<1x144xf32> to vector<1x128xf32>
    %12 = vector.extract_strided_slice %7 {offsets = [0, 4], sizes = [1, 128], strides = [1, 1]} : vector<1x144xf32> to vector<1x128xf32>
    %13 = vector.extract_strided_slice %7 {offsets = [0, 5], sizes = [1, 128], strides = [1, 1]} : vector<1x144xf32> to vector<1x128xf32>
    %14 = vector.extract_strided_slice %7 {offsets = [0, 6], sizes = [1, 128], strides = [1, 1]} : vector<1x144xf32> to vector<1x128xf32>
    %15 = vector.extract_strided_slice %7 {offsets = [0, 7], sizes = [1, 128], strides = [1, 1]} : vector<1x144xf32> to vector<1x128xf32>
    %16 = vector.extract_strided_slice %7 {offsets = [0, 8], sizes = [1, 128], strides = [1, 1]} : vector<1x144xf32> to vector<1x128xf32>
    %17 = vector.extract_strided_slice %7 {offsets = [0, 9], sizes = [1, 128], strides = [1, 1]} : vector<1x144xf32> to vector<1x128xf32>
    %18 = vector.extract_strided_slice %7 {offsets = [0, 10], sizes = [1, 128], strides = [1, 1]} : vector<1x144xf32> to vector<1x128xf32>
    %19 = vector.extract_strided_slice %7 {offsets = [0, 11], sizes = [1, 128], strides = [1, 1]} : vector<1x144xf32> to vector<1x128xf32>
    %20 = vector.extract_strided_slice %7 {offsets = [0, 12], sizes = [1, 128], strides = [1, 1]} : vector<1x144xf32> to vector<1x128xf32>
    %21 = vector.extract_strided_slice %7 {offsets = [0, 13], sizes = [1, 128], strides = [1, 1]} : vector<1x144xf32> to vector<1x128xf32>
    %22 = vector.extract_strided_slice %7 {offsets = [0, 14], sizes = [1, 128], strides = [1, 1]} : vector<1x144xf32> to vector<1x128xf32>
    %23 = vector.extract_strided_slice %7 {offsets = [0, 15], sizes = [1, 128], strides = [1, 1]} : vector<1x144xf32> to vector<1x128xf32>
    %24 = tpu.concatenate %8, %9, %10, %11, %12, %13, %14, %15, %16, %17, %18, %19, %20, %21, %22, %23 in 0 : vector<1x128xf32>, vector<1x128xf32>, vector<1x128xf32>, vector<1x128xf32>, vector<1x128xf32>, vector<1x128xf32>, vector<1x128xf32>, vector<1x128xf32>, vector<1x128xf32>, vector<1x128xf32>, vector<1x128xf32>, vector<1x128xf32>, vector<1x128xf32>, vector<1x128xf32>, vector<1x128xf32>, vector<1x128xf32> -> vector<16x128xf32>
    %c0_3 = arith.constant 0 : index
    %c0_4 = arith.constant 0 : index
    %25 = vector.load %arg4[%c0_3, %c0_4] : memref<128x16xf32, #tpu.memory_space<vmem>>, vector<128x16xf32>
    %cst_5 = arith.constant dense<0.000000e+00> : vector<128x128xf32>
    %26 = tpu.matmul %25, %24, %cst_5 {dimension_numbers = #tpu.dot_dimension_numbers<[1], [0], [0], [1], [0, 0, 1, 1], [], []>} : vector<128x16xf32>, vector<16x128xf32>, vector<128x128xf32> -> vector<128x128xf32>
    %c0_i32 = arith.constant 0 : i32
    %27 = arith.cmpi eq, %arg0, %c0_i32 : i32
    %c0_i32_6 = arith.constant 0 : i32
    %28 = arith.cmpi eq, %arg1, %c0_i32_6 : i32
    %29 = arith.andi %27, %28 : i1
    %c0_i32_7 = arith.constant 0 : i32
    %30 = arith.cmpi eq, %arg2, %c0_i32_7 : i32
    %31 = arith.andi %29, %30 : i1
    %32 = arith.extui %31 : i1 to i32
    %c0_i32_8 = arith.constant 0 : i32
    %33 = arith.cmpi ne, %32, %c0_i32_8 : i32
    scf.if %33 {
      %cst_16 = arith.constant 0.000000e+00 : f32
      %47 = vector.broadcast %cst_16 : f32 to vector<128x1xf32>
      %c0_17 = arith.constant 0 : index
      %c0_18 = arith.constant 0 : index
      %48 = vector.load %arg8[%c0_17, %c0_18] : memref<128x1xf32, #tpu.memory_space<vmem>>, vector<128x1xf32>
      tpu.vector_store %arg8[%c0_17, %c0_18], %47 {strides = array<i32>} : memref<128x1xf32, #tpu.memory_space<vmem>>, vector<128x1xf32>,
      %cst_19 = arith.constant 0.000000e+00 : f32
      %49 = vector.broadcast %cst_19 : f32 to vector<128x1xf32>
      %c0_20 = arith.constant 0 : index
      %c0_21 = arith.constant 0 : index
      %50 = vector.load %arg9[%c0_20, %c0_21] : memref<128x1xf32, #tpu.memory_space<vmem>>, vector<128x1xf32>
      tpu.vector_store %arg9[%c0_20, %c0_21], %49 {strides = array<i32>} : memref<128x1xf32, #tpu.memory_space<vmem>>, vector<128x1xf32>,
    } else {
    }
    %c0_i32_9 = arith.constant 0 : i32
    %34 = arith.cmpi eq, %arg0, %c0_i32_9 : i32
    %35 = arith.extui %34 : i1 to i32
    %c0_i32_10 = arith.constant 0 : i32
    %36 = arith.cmpi ne, %35, %c0_i32_10 : i32
    scf.if %36 {
      %c0_16 = arith.constant 0 : index
      %c0_17 = arith.constant 0 : index
      %47 = vector.load %arg8[%c0_16, %c0_17] : memref<128x1xf32, #tpu.memory_space<vmem>>, vector<128x1xf32>
      %cst_18 = arith.constant dense<0.000000e+00> : vector<128xf32>
      %48 = vector.multi_reduction <add>, %26, %cst_18 [1] : vector<128x128xf32> to vector<128xf32>
      %49 = vector.shape_cast %48 : vector<128xf32> to vector<128x1xf32>
      %50 = arith.addf %47, %49 : vector<128x1xf32>
      %c0_19 = arith.constant 0 : index
      %c0_20 = arith.constant 0 : index
      %51 = vector.load %arg8[%c0_19, %c0_20] : memref<128x1xf32, #tpu.memory_space<vmem>>, vector<128x1xf32>
      tpu.vector_store %arg8[%c0_19, %c0_20], %50 {strides = array<i32>} : memref<128x1xf32, #tpu.memory_space<vmem>>, vector<128x1xf32>,
      %c0_21 = arith.constant 0 : index
      %c0_22 = arith.constant 0 : index
      %52 = vector.load %arg9[%c0_21, %c0_22] : memref<128x1xf32, #tpu.memory_space<vmem>>, vector<128x1xf32>
      %53 = arith.mulf %26, %26 : vector<128x128xf32>
      %cst_23 = arith.constant dense<0.000000e+00> : vector<128xf32>
      %54 = vector.multi_reduction <add>, %53, %cst_23 [1] : vector<128x128xf32> to vector<128xf32>
      %55 = vector.shape_cast %54 : vector<128xf32> to vector<128x1xf32>
      %56 = arith.addf %52, %55 : vector<128x1xf32>
      %c0_24 = arith.constant 0 : index
      %c0_25 = arith.constant 0 : index
      %57 = vector.load %arg9[%c0_24, %c0_25] : memref<128x1xf32, #tpu.memory_space<vmem>>, vector<128x1xf32>
      tpu.vector_store %arg9[%c0_24, %c0_25], %56 {strides = array<i32>} : memref<128x1xf32, #tpu.memory_space<vmem>>, vector<128x1xf32>,
    } else {
    }
    %c1_i32 = arith.constant 1 : i32
    %37 = arith.cmpi eq, %arg0, %c1_i32 : i32
    %c0_i32_11 = arith.constant 0 : i32
    %38 = arith.cmpi eq, %arg1, %c0_i32_11 : i32
    %39 = arith.andi %37, %38 : i1
    %c0_i32_12 = arith.constant 0 : i32
    %40 = arith.cmpi eq, %arg2, %c0_i32_12 : i32
    %41 = arith.andi %39, %40 : i1
    %42 = arith.extui %41 : i1 to i32
    %c0_i32_13 = arith.constant 0 : i32
    %43 = arith.cmpi ne, %42, %c0_i32_13 : i32
    scf.if %43 {
      %cst_16 = arith.constant 0.000000e+00 : f32
      %47 = vector.broadcast %cst_16 : f32 to vector<128x4xf32>
      %c0_17 = arith.constant 0 : index
      %c0_18 = arith.constant 0 : index
      %48 = vector.load %arg7[%c0_17, %c0_18] : memref<128x4xf32, #tpu.memory_space<vmem>>, vector<128x4xf32>
      tpu.vector_store %arg7[%c0_17, %c0_18], %47 {strides = array<i32>} : memref<128x4xf32, #tpu.memory_space<vmem>>, vector<128x4xf32>,
    } else {
    }
    %c1_i32_14 = arith.constant 1 : i32
    %44 = arith.cmpi eq, %arg0, %c1_i32_14 : i32
    %45 = arith.extui %44 : i1 to i32
    %c0_i32_15 = arith.constant 0 : i32
    %46 = arith.cmpi ne, %45, %c0_i32_15 : i32
    scf.if %46 {
      %c0_16 = arith.constant 0 : index
      %c0_17 = arith.constant 0 : index
      %47 = vector.load %arg8[%c0_16, %c0_17] : memref<128x1xf32, #tpu.memory_space<vmem>>, vector<128x1xf32>
      %cst_18 = arith.constant 9.765625E-4 : f32
      %48 = vector.broadcast %cst_18 : f32 to vector<128x1xf32>
      %49 = arith.mulf %47, %48 : vector<128x1xf32>
      %c0_19 = arith.constant 0 : index
      %c0_20 = arith.constant 0 : index
      %50 = vector.load %arg9[%c0_19, %c0_20] : memref<128x1xf32, #tpu.memory_space<vmem>>, vector<128x1xf32>
      %cst_21 = arith.constant 9.765625E-4 : f32
      %51 = vector.broadcast %cst_21 : f32 to vector<128x1xf32>
      %52 = arith.mulf %50, %51 : vector<128x1xf32>
      %53 = arith.mulf %49, %49 : vector<128x1xf32>
      %54 = arith.subf %52, %53 : vector<128x1xf32>
      %c0_22 = arith.constant 0 : index
      %c0_23 = arith.constant 0 : index
      %55 = vector.load %arg5[%c0_22, %c0_23] : memref<128x1xf32, #tpu.memory_space<vmem>>, vector<128x1xf32>
      %cst_24 = arith.constant 9.99999974E-6 : f32
      %56 = vector.broadcast %cst_24 : f32 to vector<128x1xf32>
      %57 = arith.addf %54, %56 : vector<128x1xf32>
      %58 = math.rsqrt %57 : vector<128x1xf32>
      %59 = arith.mulf %55, %58 : vector<128x1xf32>
      %c0_25 = arith.constant 0 : index
      %c0_26 = arith.constant 0 : index
      %60 = vector.load %arg6[%c0_25, %c0_26] : memref<128x1xf32, #tpu.memory_space<vmem>>, vector<128x1xf32>
      %61 = arith.mulf %49, %59 : vector<128x1xf32>
      %62 = arith.subf %60, %61 : vector<128x1xf32>
      %63 = vector.broadcast %59 : vector<128x1xf32> to vector<128x128xf32>
      %64 = arith.mulf %26, %63 : vector<128x128xf32>
      %65 = vector.broadcast %62 : vector<128x1xf32> to vector<128x128xf32>
      %66 = arith.addf %64, %65 : vector<128x128xf32>
      %cst_27 = arith.constant 0.000000e+00 : f32
      %67 = vector.broadcast %cst_27 : f32 to vector<128x128xf32>
      %68 = arith.maximumf %66, %67 : vector<128x128xf32>
      %cst_28 = arith.constant dense<0.000000e+00> : vector<128xf32>
      %69 = vector.multi_reduction <add>, %68, %cst_28 [1] : vector<128x128xf32> to vector<128xf32>
      %70 = vector.shape_cast %69 : vector<128xf32> to vector<128x1xf32>
      %cst_29 = arith.constant 3.906250e-03 : f32
      %71 = vector.broadcast %cst_29 : f32 to vector<128x1xf32>
      %72 = arith.mulf %70, %71 : vector<128x1xf32>
      %73 = tpu.iota {dimensions = array<i32: 1>} : vector<128x4xi32>
      %c0_30 = arith.constant 0 : index
      %c0_31 = arith.constant 0 : index
      %74 = vector.load %arg7[%c0_30, %c0_31] : memref<128x4xf32, #tpu.memory_space<vmem>>, vector<128x4xf32>
      %75 = vector.broadcast %arg1 : i32 to vector<128x4xi32>
      %76 = arith.cmpi eq, %73, %75 : vector<128x4xi32>
      %cst_32 = arith.constant 0.000000e+00 : f32
      %77 = vector.shape_cast %72 : vector<128x1xf32> to vector<128x1xf32>
      %78 = vector.broadcast %77 : vector<128x1xf32> to vector<128x4xf32>
      %79 = vector.broadcast %cst_32 : f32 to vector<128x4xf32>
      %80 = arith.select %76, %78, %79 : vector<128x4xi1>, vector<128x4xf32>
      %81 = arith.addf %74, %80 : vector<128x4xf32>
      %c0_33 = arith.constant 0 : index
      %c0_34 = arith.constant 0 : index
      %82 = vector.load %arg7[%c0_33, %c0_34] : memref<128x4xf32, #tpu.memory_space<vmem>>, vector<128x4xf32>
      tpu.vector_store %arg7[%c0_33, %c0_34], %81 {strides = array<i32>} : memref<128x4xf32, #tpu.memory_space<vmem>>, vector<128x4xf32>,
    } else {
    }
    return
  }
  func.func @transform_0(%arg0: i32, %arg1: i32, %arg2: i32) -> (i32, i32, i32, i32) {
    %c0_i32 = arith.constant 0 : i32
    %c0_i32_0 = arith.constant 0 : i32
    %c0_i32_1 = arith.constant 0 : i32
    return %arg2, %arg1, %c0_i32, %c0_i32_0 : i32, i32, i32, i32
  }
  func.func @transform_1(%arg0: i32, %arg1: i32, %arg2: i32) -> (i32, i32) {
    %c0_i32 = arith.constant 0 : i32
    %c0_i32_0 = arith.constant 0 : i32
    %c0_i32_1 = arith.constant 0 : i32
    return %c0_i32, %c0_i32_0 : i32, i32
  }
  func.func @transform_2(%arg0: i32, %arg1: i32, %arg2: i32) -> (i32, i32) {
    %c0_i32 = arith.constant 0 : i32
    %c0_i32_0 = arith.constant 0 : i32
    %c0_i32_1 = arith.constant 0 : i32
    return %c0_i32, %c0_i32_0 : i32, i32
  }
  func.func @transform_3(%arg0: i32, %arg1: i32, %arg2: i32) -> (i32, i32) {
    %c0_i32 = arith.constant 0 : i32
    %c0_i32_0 = arith.constant 0 : i32
    %c0_i32_1 = arith.constant 0 : i32
    return %c0_i32, %c0_i32_0 : i32, i32
  }
  func.func @transform_4(%arg0: i32, %arg1: i32, %arg2: i32) -> (i32, i32) {
    %c0_i32 = arith.constant 0 : i32
    %c0_i32_0 = arith.constant 0 : i32
    %c0_i32_1 = arith.constant 0 : i32
    return %c0_i32, %c0_i32_0 : i32, i32
  }
}

</mosaic_0001>

<bundles_post_ra>
// kernel: tpu_custom_call.1
= control target key start
LH: loop header
LB: loop body
LE: loop exit
PB: predicated region body
PF: predicated region fallthrough
CT: control target
= control target key end

     0   :  { %s1779_s15 = smov 0   ;;  %s1781_s16 = smov 0   ;;  %s2874_s0 = inlined_call_operand.vmem [shape: f32[2,4,2,144], index: 0, kind: input, shape index: {}]   ;;  %s2875_s1 = inlined_call_operand.vmem [shape: f32[128,16], index: 1, kind: input, shape index: {}]   ;;  %s2876_s2 = inlined_call_operand.vmem [shape: f32[128,1], index: 2, kind: input, shape index: {}]   ;;  %s2877_s3 = inlined_call_operand.vmem [shape: f32[128,1], index: 3, kind: input, shape index: {}]   ;;  %s2878_s4 = inlined_call_operand.vmem [shape: f32[128,4], index: 4, kind: output, shape index: {}]  }
   0x1   :  { %s1783_s17 = smov 0   ;;  %s1785_s18 = smov 0  }
   0x2   :  { %s1787_s19 = smov 0   ;;  %s1789_s20 = smov 0  }
   0x3   :  { %s1791_s21 = smov 0  }
   0x4 LB: > { %s26_s22 = sadd.s32 1, %s1722_s18  ;;  %s29_s23 = sadd.s32 1, %s1726_s19  ;;  %s1734_s21 = sphi %s1791_s21, %s14_s21   ;;  %s1730_s20 = sphi %s1789_s20, %s2925_s20   ;;  %s1726_s19 = sphi %s1787_s19, %s2924_s19   ;;  %s1722_s18 = sphi %s1785_s18, %s2923_s18   ;;  %s1718_s17 = sphi %s1783_s17, %s2922_s17   ;;  %s1714_s16 = sphi %s1781_s16, %s2921_s16   ;;  %s1710_s15 = sphi %s1779_s15, %s2920_s15  }
   0x5   : > { %p27_p0 = scmp.ge.s32.totalorder %s26_s22, 2  ;;  %p1465_p1 = scmp.ge.s32.totalorder %s1734_s21, 1 }
   0x6   : > { %p182_p2 = scmp.lt.s32.totalorder %s1734_s21, 17  ;;  %s33_s24 = sadd.s32 1, %s1730_s20 }
   0x7   : > { %s2927_s22 = smov (%p27_p0, %s26_s22), 0  ;;  %s2929_s23 = smov (!%p27_p0, %s29_s23), %s1726_s19 }
   0x8   : > { %p183_p3 = pnand %p1465_p1, %p182_p2  ;;  %p31_p4 = scmp.ge.s32.totalorder %s2929_s23, 4 }
   0xa   : > { %s2931_s23 = smov (%p31_p4, %s2929_s23), 0  ;;  %s2933_s24 = smov (!%p31_p4, %s33_s24), %s1730_s20 }
   0xb   : > { %p35_p5 = scmp.ge.s32.totalorder %s2933_s24, 2  ;;  %186 = sbr.rel (%p183_p3) target bundleno = 985 (0x3d9), region = 36 }
   0xd   : > { %s2935_s24 = smov (%p35_p5, %s2933_s24), 0 }
  0x10   : > { %p207_p6 = scmp.lt.s32.totalorder %s1710_s15, 1  ;;  %p209_p7 = scmp.lt.s32.totalorder %s1714_s16, 3  ;;  %vm293_vm0 = vcmask 965632   ;;  %vm279_vm1 = vcmask 982016   ;;  %vm300_vm2 = vcmask 957440   ;;  %vm286_vm3 = vcmask 973824  }
  0x11   : > { %s1736_s8 = smov 118   ;;  %s1737_s9 = smov 120   ;;  %vm230_vm4 = vcmask 1039360   ;;  %vm331_vm5 = vcmask 1040384   ;;  %vm333_vm6 = vcmask 1041408   ;;  %vm237_vm7 = vcmask 1031168  }
  0x12   : > { %s208_s25 = scalar_select %p207_p6, %s1710_s15, 1  ;;  %vm244_vm8 = vcmask 1022976   ;;  %vm335_vm9 = vcmask 1042432   ;;  %vm307_vm10 = vcmask 949248   ;;  %vm337_vm11 = vcmask 1043456  }
  0x13   : > { %s210_s26 = scalar_select %p209_p7, %s1714_s16, 3  ;;  %vm314_vm12 = vcmask 941056   ;;  %vm321_vm13 = vcmask 932864   ;;  %vm339_vm14 = vcmask 1044480   ;;  %vm251_vm15 = vcmask 1014784  }
  0x14   : > { %s1467_s27 = sshll.u32 %s208_s25, 3  ;;  %s1738_s10 = smov 117  }
  0x15   : > { %s1466_s28 = sshll.u32 %s210_s26, 1  ;;  %s1739_s11 = smov 127  }
  0x16   : > { %s213_s29 = sadd.s32 %s1467_s27, %s1466_s28  ;;  %s1740_s12 = smov 119  }
  0x17   : > { %s1468_s30 = sshll.u32 %s213_s29, 1  ;;  %s1741_s13 = smov 126  }
  0x18   : > { %s215_s7 = scalar_lea.vmem %s2874_s0, %s1468_s30  ;;  %s1742_s14 = smov 125  }
  0x19   : > { %v216_v0 = vld [vmem:[%s215_s7] sm:$0xf]  ;;  %s1743_s25 = smov 116   ;;  %s1744_s26 = smov 115  }
  0x1a   : > { %v1469_v1 = vrot.slane %v216_v0, 9  ;;  %s1745_s27 = smov 114   ;;  %s1746_s28 = smov 124  }
  0x1b   : > { %s1747_s29 = smov 123   ;;  %s1748_s30 = smov 122  }
  0x1c   : > { %v221_v2 = vadd.f32 %v1469_v1, %v216_v0  ;;  %s1749_s5 = smov 113   ;;  %s1750_s6 = smov 121  }
  0x1d   : > { %p482_p8 = scmp.eq.s32.totalorder %s1718_s17, 0  ;;  %p483_p9 = scmp.eq.s32.totalorder %s1714_s16, 0 }
  0x1e   : > { %v1834_v3 = vmul.f32 0.5, %v221_v2  ;;  %p486_p12 = scmp.eq.s32.totalorder %s1710_s15, 0 }
  0x1f   : > { %p484_p10 = pnand %p483_p9, %p482_p8 }
  0x20   : > { %v224_v4 = vperm.slane %v1834_v3, 0  ;;  %v225_v5 = vperm.slane %v1834_v3, 2 }
  0x21   : > { %p485_p11 = pneg %p484_p10 }
  0x22   : > { %v1580_v6 = vpack.i.bf16 %v225_v5, %v224_v4 }
  0x23   : > { %p1940_p13 = pnand %p486_p12, %p485_p11 }
  0x24   : > { %1581 = vrot.lane.b32.xlu1 %v1580_v6, %s1736_s8  ;;  %1571 = vrot.lane.b32.xlu0 %v1580_v6, %s1737_s9 }
  0x25   : > { %1591 = vrot.lane.b32.xlu2 %v1580_v6, %s1738_s10 }
  0x2c   : > { %1586 = vrot.lane.b32.xlu1 %v1580_v6, %s1739_s11  ;;  %1576 = vrot.lane.b32.xlu0 %v1580_v6, %s1740_s12 }
  0x2d   : > { %1596 = vrot.lane.b32.xlu2 %v1580_v6, %s1741_s13 }
  0x34   : > { %1606 = vrot.lane.b32.xlu1 %v1580_v6, %s1742_s14  ;;  %1601 = vrot.lane.b32.xlu0 %v1580_v6, %s1743_s25 }
  0x35   : > { %1611 = vrot.lane.b32.xlu2 %v1580_v6, %s1744_s26 }
  0x3c   : > { %1621 = vrot.lane.b32.xlu1 %v1580_v6, %s1745_s27  ;;  %1616 = vrot.lane.b32.xlu0 %v1580_v6, %s1746_s28 }
  0x3d   : > { %1626 = vrot.lane.b32.xlu2 %v1580_v6, %s1747_s29 }
  0x44   : > { %1636 = vrot.lane.b32.xlu1 %v1580_v6, %s1748_s30  ;;  %1631 = vrot.lane.b32.xlu0 %v1580_v6, %s1749_s5 }
  0x45   : > { %1641 = vrot.lane.b32.xlu2 %v1580_v6, %s1750_s6 }
  0x7f   : > { %v1592_v7 = vpop.permute.xlu2 %1591 }
  0x80   : > { %v1594_v14 = vunpack.i.h.bf16 %v1592_v7  ;;  %v1593_v15 = vunpack.i.l.bf16 %v1592_v7 }
  0x82   : > { %v301_v25 = vsel %vm300_vm2, %v1593_v15, %v1594_v14  ;;  %vm341_vm2 = vcmask 1045504  }
  0x87   : > { %v1597_v8 = vpop.permute.xlu2 %1596 }
  0x88   : > { %v1599_v27 = vunpack.i.h.bf16 %v1597_v8  ;;  %v1598_v28 = vunpack.i.l.bf16 %v1597_v8 }
  0x8a   : > { %v238_v45 = vsel %vm237_vm7, %v1598_v28, %v1599_v27  ;;  %v354_v27 = vld [vmem:[%s2875_s1 + $0x10] sm:$0xff] }
  0x8b   : > { %v358_v28 = vld [vmem:[%s2875_s1 + $0x30] sm:$0xff] }
  0x8f   : > { %v1838_v11 = vpop.permute.xlu2 %1611 }
  0x90   : > { %v1614_v40 = vunpack.i.h.bf16 %v1838_v11  ;;  %v1613_v41 = vunpack.i.l.bf16 %v1838_v11 }
  0x92   : > { %v315_v55 = vsel %vm314_vm12, %v1613_v41, %v1614_v40 }
  0x96   : > { %v1582_v9 = vpop.permute.xlu1 %1581  ;;  %v1572_v10 = vpop.permute.xlu0 %1571 }
  0x97   : > { %v1840_v20 = vpop.permute.xlu2 %1626  ;;  %v1574_v21 = vunpack.i.h.bf16 %v1572_v10  ;;  %v1573_v22 = vunpack.i.l.bf16 %v1572_v10  ;;  %v1584_v29 = vunpack.i.h.bf16 %v1582_v9  ;;  %v1583_v30 = vunpack.i.l.bf16 %v1582_v9 }
  0x98   : > { %v1629_v48 = vunpack.i.h.bf16 %v1840_v20  ;;  %v1628_v49 = vunpack.i.l.bf16 %v1840_v20  ;;  %v356_v20 = vld [vmem:[%s2875_s1 + $0x20] sm:$0xff] }
  0x99   : > { %v280_v31 = vsel %vm279_vm1, %v1573_v22, %v1574_v21  ;;  %v294_v44 = vsel %vm293_vm0, %v1583_v30, %v1584_v29  ;;  %vm258_vm1 = vcmask 1006592   ;;  %vm265_vm0 = vcmask 998400   ;;  %v361_v21 = vld [vmem:[%s2875_s1 + $0x48] sm:$0xff]  ;;  %v363_v29 = vld [vmem:[%s2875_s1 + $0x58] sm:$0xff] }
  0x9a   : > { %v259_v1 = vsel %vm258_vm1, %v1628_v49, %v1629_v48  ;;  %v365_v22 = vld [vmem:[%s2875_s1 + $0x68] sm:$0xff]  ;;  %v367_v30 = vld [vmem:[%s2875_s1 + $0x78] sm:$0xff] }
  0x9e   : > { %v1587_v12 = vpop.permute.xlu1 %1586  ;;  %v1577_v13 = vpop.permute.xlu0 %1576 }
  0x9f   : > { %v1579_v16 = vunpack.i.h.bf16 %v1577_v13  ;;  %v1578_v17 = vunpack.i.l.bf16 %v1577_v13  ;;  %v1589_v23 = vunpack.i.h.bf16 %v1587_v12  ;;  %v1588_v24 = vunpack.i.l.bf16 %v1587_v12  ;;  %v1642_v50 = vpop.permute.xlu2 %1641 }
  0xa0   : > { %v1644_v59 = vunpack.i.h.bf16 %v1642_v50  ;;  %v1643_v60 = vunpack.i.l.bf16 %v1642_v50 }
  0xa1   : > { %v287_v26 = vsel %vm286_vm3, %v1578_v17, %v1579_v16  ;;  %v231_v32 = vsel %vm230_vm4, %v1588_v24, %v1589_v23  ;;  %vm328_vm3 = vcmask 924672   ;;  %vm272_vm4 = vcmask 990208   ;;  %v360_v17 = vld [vmem:[%s2875_s1 + $0x40] sm:$0xff]  ;;  %v353_v23 = vld [vmem:[%s2875_s1 + $0x8] sm:$0xff] }
  0xa2   : > { %v345_v33 = vsel %vm331_vm5, %v280_v31, %v287_v26  ;;  %v332_v46 = vsel %vm331_vm5, %v1834_v3, %v231_v32  ;;  %vm343_vm5 = vcmask 1046528   ;;  %v273_v8 = vsel %vm272_vm4, %v1643_v60, %v1644_v59  ;;  %v357_v24 = vld [vmem:[%s2875_s1 + $0x28] sm:$0xff]  ;;  %v366_v26 = vld [vmem:[%s2875_s1 + $0x70] sm:$0xff]  ;;  %v355_v31 = vld [vmem:[%s2875_s1 + $0x18] sm:$0xff] }
  0xa3   : > { %v346_v47 = vsel %vm333_vm6, %v345_v33, %v294_v44  ;;  %v334_v57 = vsel %vm333_vm6, %v332_v46, %v238_v45  ;;  %vm368_vm6 = vcmask 130048   ;;  %v359_v32 = vld [vmem:[%s2875_s1 + $0x38] sm:$0xff] }
  0xa4   : > { %v347_v58 = vsel %vm335_vm9, %v346_v47, %v301_v25  ;;  %v362_v25 = vld [vmem:[%s2875_s1 + $0x50] sm:$0xff] }
  0xa6   : > { %v1607_v18 = vpop.permute.xlu1 %1606  ;;  %v1602_v19 = vpop.permute.xlu0 %1601 }
  0xa7   : > { %v1609_v34 = vunpack.i.h.bf16 %v1607_v18  ;;  %v1608_v35 = vunpack.i.l.bf16 %v1607_v18  ;;  %v1604_v36 = vunpack.i.h.bf16 %v1602_v19  ;;  %v1603_v37 = vunpack.i.l.bf16 %v1602_v19  ;;  %v364_v18 = vld [vmem:[%s2875_s1 + $0x60] sm:$0xff] }
  0xa8   : > { %v352_v19 = vld [vmem:[%s2875_s1] sm:$0xff] }
  0xa9   : > { %v245_v51 = vsel %vm244_vm8, %v1608_v35, %v1609_v34  ;;  %v308_v52 = vsel %vm307_vm10, %v1603_v37, %v1604_v36 }
  0xaa   : > { %v336_v61 = vsel %vm335_vm9, %v334_v57, %v245_v51  ;;  %v348_v62 = vsel %vm337_vm11, %v347_v58, %v308_v52 }
  0xab   : > { %v349_v9 = vsel %vm339_vm14, %v348_v62, %v315_v55 }
  0xae   : > { %v1622_v38 = vpop.permute.xlu1 %1621  ;;  %v1617_v39 = vpop.permute.xlu0 %1616 }
  0xaf   : > { %v1619_v42 = vunpack.i.h.bf16 %v1617_v39  ;;  %v1618_v43 = vunpack.i.l.bf16 %v1617_v39  ;;  %v1624_v53 = vunpack.i.h.bf16 %v1622_v38  ;;  %v1623_v54 = vunpack.i.l.bf16 %v1622_v38 }
  0xb1   : > { %v252_v56 = vsel %vm251_vm15, %v1618_v43, %v1619_v42  ;;  %v322_v63 = vsel %vm321_vm13, %v1623_v54, %v1624_v53 }
  0xb2   : > { %v338_v0 = vsel %vm337_vm11, %v336_v61, %v252_v56  ;;  %v350_v12 = vsel %vm341_vm2, %v349_v9, %v322_v63 }
  0xb3   : > { %v340_v13 = vsel %vm339_vm14, %v338_v0, %v259_v1 }
  0xb6   : > { %v1637_v2 = vpop.permute.xlu1 %1636  ;;  %v1632_v3 = vpop.permute.xlu0 %1631 }
  0xb7   : > { %v1639_v4 = vunpack.i.h.bf16 %v1637_v2  ;;  %v1638_v5 = vunpack.i.l.bf16 %v1637_v2  ;;  %v1634_v6 = vunpack.i.h.bf16 %v1632_v3  ;;  %v1633_v7 = vunpack.i.l.bf16 %v1632_v3 }
  0xb9   : > { %v266_v10 = vsel %vm265_vm0, %v1638_v5, %v1639_v4  ;;  %v329_v11 = vsel %vm328_vm3, %v1633_v7, %v1634_v6 }
  0xba   : > { %v351_v14 = vsel %vm343_vm5, %v350_v12, %v329_v11  ;;  %v342_v15 = vsel %vm341_vm2, %v340_v13, %v266_v10 }
  0xbb   : > { %431 = vmatpush.msra.mxu0 %v351_v14  ;;  %1490 = vmatpush.msra.mxu1 %v351_v14  ;;  %v344_v16 = vsel %vm343_vm5, %v342_v15, %v273_v8 }
  0xbc   : > { %1491 = vmatpush.msra.mxu2 %v351_v14  ;;  %1492 = vmatpush.msra.mxu3 %v351_v14 }
  0xbd   : > { %432 = vmatpush.msra.mxu0 %v344_v16  ;;  %1493 = vmatpush.msra.mxu1 %v344_v16 }
  0xbe   : > { %1494 = vmatpush.msra.mxu2 %v344_v16  ;;  %1495 = vmatpush.msra.mxu3 %v344_v16 }
  0xbf   : > { %1478 = vmatmul.msk.f32.vlgmr.msra.gmra.mxu2 %vm368_vm6, %v360_v17  ;;  %1482 = vmatmul.msk.f32.vlgmr.msra.gmra.mxu3 %vm368_vm6, %v364_v18 }
  0xc0   : > { %1470 = vmatmul.msk.f32.vlgmr.msra.gmra.mxu0 %vm368_vm6, %v352_v19  ;;  %1474 = vmatmul.msk.f32.vlgmr.msra.gmra.mxu1 %vm368_vm6, %v356_v20 }
  0xc7   : > { %1479 = vmatmul.msk.f32.gmra.mxu2 %vm368_vm6, %v361_v21  ;;  %1483 = vmatmul.msk.f32.gmra.mxu3 %vm368_vm6, %v365_v22 }
  0xc8   : > { %1471 = vmatmul.msk.f32.gmra.mxu0 %vm368_vm6, %v353_v23  ;;  %1475 = vmatmul.msk.f32.gmra.mxu1 %vm368_vm6, %v357_v24 }
  0xcf   : > { %1480 = vmatmul.msk.f32.gmra.mxu2 %vm368_vm6, %v362_v25  ;;  %1484 = vmatmul.msk.f32.gmra.mxu3 %vm368_vm6, %v366_v26 }
  0xd0   : > { %1472 = vmatmul.msk.f32.gmra.mxu0 %vm368_vm6, %v354_v27  ;;  %1476 = vmatmul.msk.f32.gmra.mxu1 %vm368_vm6, %v358_v28 }
  0xd7   : > { %1481 = vmatmul.msk.f32.gmra.mxu2 %vm368_vm6, %v363_v29  ;;  %1485 = vmatmul.msk.f32.gmra.mxu3 %vm368_vm6, %v367_v30 }
  0xd8   : > { %1473 = vmatmul.msk.f32.gmra.mxu0 %vm368_vm6, %v355_v31  ;;  %1477 = vmatmul.msk.f32.gmra.mxu1 %vm368_vm6, %v359_v32 }
 0x13d   : > { %v1944_v33 = vpop.f32.mrf.mxu0  ;;  %v1946_v34 = vpop.f32.mrf.mxu1 }
 0x142   : > { %v1948_v35 = vpop.f32.mrf.mxu2  ;;  %v1950_v36 = vpop.f32.mrf.mxu3 }
 0x145   : > { %v1952_v37 = vpop.f32.mrf.mxu0  ;;  %v1954_v38 = vpop.f32.mrf.mxu1 }
 0x14a   : > { %v1956_v39 = vpop.f32.mrf.mxu2  ;;  %v1958_v40 = vpop.f32.mrf.mxu3 }
 0x14b   : > { %2884 = vst [vmem:[#allocation4_spill] sm:$0xff] %v1958_v40 }
 0x14d   : > { %v1960_v41 = vpop.f32.mrf.mxu0  ;;  %v1962_v42 = vpop.f32.mrf.mxu1 }
 0x152   : > { %v1964_v43 = vpop.f32.mrf.mxu2  ;;  %v1966_v44 = vpop.f32.mrf.mxu3 }
 0x153   : > { %2885 = vst [vmem:[#allocation5_spill] sm:$0xff] %v1966_v44 }
 0x155   : > { %v1968_v45 = vpop.f32.mrf.mxu0  ;;  %v1970_v46 = vpop.f32.mrf.mxu1 }
 0x158   : > { %490 = sbr.rel (%p1940_p13) target bundleno = 382 (0x17e), region = 40 }
 0x15a   : > { %v1972_v47 = vpop.f32.mrf.mxu2  ;;  %v1974_v48 = vpop.f32.mrf.mxu3 }
 0x15b   : > { %2886 = vst [vmem:[#allocation6_spill] sm:$0xff] %v1972_v47 }
 0x15c   : > { %2887 = vst [vmem:[#allocation7_spill] sm:$0xff] %v1974_v48 }
 0x15d   : > { %vm491_vm7 = vcmask 7168   ;;  %v1751_v49 = vmov 0.0  }
 0x15e   : > { %492 = vst.msk [vmem:[#allocation2] sm:$0xff] %vm491_vm7, %v1751_v49 }
 0x15f   : > { %493 = vst.msk [vmem:[#allocation2 + $0x8] sm:$0xff] %vm491_vm7, %v1751_v49 }
 0x160   : > { %494 = vst.msk [vmem:[#allocation2 + $0x10] sm:$0xff] %vm491_vm7, %v1751_v49 }
 0x161   : > { %495 = vst.msk [vmem:[#allocation2 + $0x18] sm:$0xff] %vm491_vm7, %v1751_v49 }
 0x162   : > { %496 = vst.msk [vmem:[#allocation2 + $0x20] sm:$0xff] %vm491_vm7, %v1751_v49 }
 0x163   : > { %497 = vst.msk [vmem:[#allocation2 + $0x28] sm:$0xff] %vm491_vm7, %v1751_v49 }
 0x164   : > { %498 = vst.msk [vmem:[#allocation2 + $0x30] sm:$0xff] %vm491_vm7, %v1751_v49 }
 0x165   : > { %499 = vst.msk [vmem:[#allocation2 + $0x38] sm:$0xff] %vm491_vm7, %v1751_v49 }
 0x166   : > { %500 = vst.msk [vmem:[#allocation2 + $0x40] sm:$0xff] %vm491_vm7, %v1751_v49 }
 0x167   : > { %501 = vst.msk [vmem:[#allocation2 + $0x48] sm:$0xff] %vm491_vm7, %v1751_v49 }
 0x168   : > { %502 = vst.msk [vmem:[#allocation2 + $0x50] sm:$0xff] %vm491_vm7, %v1751_v49 }
 0x169   : > { %503 = vst.msk [vmem:[#allocation2 + $0x58] sm:$0xff] %vm491_vm7, %v1751_v49 }
 0x16a   : > { %504 = vst.msk [vmem:[#allocation2 + $0x60] sm:$0xff] %vm491_vm7, %v1751_v49 }
 0x16b   : > { %505 = vst.msk [vmem:[#allocation2 + $0x68] sm:$0xff] %vm491_vm7, %v1751_v49 }
 0x16c   : > { %506 = vst.msk [vmem:[#allocation2 + $0x70] sm:$0xff] %vm491_vm7, %v1751_v49 }
 0x16d   : > { %507 = vst.msk [vmem:[#allocation2 + $0x78] sm:$0xff] %vm491_vm7, %v1751_v49 }
 0x16e   : > { %508 = vst.msk [vmem:[#allocation3] sm:$0xff] %vm491_vm7, %v1751_v49 }
 0x16f   : > { %509 = vst.msk [vmem:[#allocation3 + $0x8] sm:$0xff] %vm491_vm7, %v1751_v49 }
 0x170   : > { %510 = vst.msk [vmem:[#allocation3 + $0x10] sm:$0xff] %vm491_vm7, %v1751_v49 }
 0x171   : > { %511 = vst.msk [vmem:[#allocation3 + $0x18] sm:$0xff] %vm491_vm7, %v1751_v49 }
 0x172   : > { %512 = vst.msk [vmem:[#allocation3 + $0x20] sm:$0xff] %vm491_vm7, %v1751_v49 }
 0x173   : > { %513 = vst.msk [vmem:[#allocation3 + $0x28] sm:$0xff] %vm491_vm7, %v1751_v49 }
 0x174   : > { %514 = vst.msk [vmem:[#allocation3 + $0x30] sm:$0xff] %vm491_vm7, %v1751_v49 }
 0x175   : > { %515 = vst.msk [vmem:[#allocation3 + $0x38] sm:$0xff] %vm491_vm7, %v1751_v49 }
 0x176   : > { %516 = vst.msk [vmem:[#allocation3 + $0x40] sm:$0xff] %vm491_vm7, %v1751_v49 }
 0x177   : > { %517 = vst.msk [vmem:[#allocation3 + $0x48] sm:$0xff] %vm491_vm7, %v1751_v49 }
 0x178   : > { %518 = vst.msk [vmem:[#allocation3 + $0x50] sm:$0xff] %vm491_vm7, %v1751_v49 }
 0x179   : > { %519 = vst.msk [vmem:[#allocation3 + $0x58] sm:$0xff] %vm491_vm7, %v1751_v49 }
 0x17a   : > { %520 = vst.msk [vmem:[#allocation3 + $0x60] sm:$0xff] %vm491_vm7, %v1751_v49 }
 0x17b   : > { %521 = vst.msk [vmem:[#allocation3 + $0x68] sm:$0xff] %vm491_vm7, %v1751_v49 }
 0x17c   : > { %522 = vst.msk [vmem:[#allocation3 + $0x70] sm:$0xff] %vm491_vm7, %v1751_v49 }
 0x17d   : > { %523 = vst.msk [vmem:[#allocation3 + $0x78] sm:$0xff] %vm491_vm7, %v1751_v49 }
 0x17e PF: > { %p1486_p0 = scmp.ne.s32.totalorder %s1718_s17, 0 }
 0x180   : > { %526 = sbr.rel (%p1486_p0) target bundleno = 589 (0x24d), region = 44 }
 0x185   : > { %547 = vadd.xlane.f32.xlu1 %v1960_v41  ;;  %543 = vadd.xlane.f32.xlu0 %v1944_v33  ;;  %v624_v50 = vmul.f32 %v1944_v33, %v1944_v33  ;;  %v625_v51 = vmul.f32 %v1952_v37, %v1952_v37  ;;  %v626_v52 = vmul.f32 %v1960_v41, %v1960_v41  ;;  %v529_v2 = vld [vmem:[#allocation2 + $0x10] sm:$0xff]  ;;  %v527_v3 = vld [vmem:[#allocation2] sm:$0xff]  ;;  %vm591_vm8 = vcmask 7168   ;;  %v530_v11 = vld [vmem:[#allocation2 + $0x18] sm:$0xff] }
 0x186   : > { %551 = vadd.xlane.f32.xlu2 %v1946_v34  ;;  %v627_v53 = vmul.f32 %v1968_v45, %v1968_v45  ;;  %v628_v54 = vmul.f32 %v1946_v34, %v1946_v34  ;;  %v629_v55 = vmul.f32 %v1954_v38, %v1954_v38  ;;  %v630_v56 = vmul.f32 %v1962_v42, %v1962_v42  ;;  %v531_v4 = vld [vmem:[#allocation2 + $0x20] sm:$0xff]  ;;  %v528_v12 = vld [vmem:[#allocation2 + $0x8] sm:$0xff]  ;;  %v534_v20 = vld [vmem:[#allocation2 + $0x38] sm:$0xff] }
 0x187   : > { %v631_v57 = vmul.f32 %v1970_v46, %v1970_v46  ;;  %v632_v58 = vmul.f32 %v1948_v35, %v1948_v35  ;;  %v633_v59 = vmul.f32 %v1956_v39, %v1956_v39  ;;  %v634_v60 = vmul.f32 %v1964_v43, %v1964_v43  ;;  %v532_v13 = vld [vmem:[#allocation2 + $0x28] sm:$0xff]  ;;  %v533_v21 = vld [vmem:[#allocation2 + $0x30] sm:$0xff]  ;;  %v535_v22 = vld [vmem:[#allocation2 + $0x40] sm:$0xff] }
 0x188   : > { %v635_v61 = vmul.f32 %v1972_v47, %v1972_v47  ;;  %v636_v62 = vmul.f32 %v1950_v36, %v1950_v36  ;;  %v637_v63 = vmul.f32 %v1958_v40, %v1958_v40  ;;  %v638_v0 = vmul.f32 %v1966_v44, %v1966_v44  ;;  %v537_v29 = vld [vmem:[#allocation2 + $0x50] sm:$0xff]  ;;  %v536_v30 = vld [vmem:[#allocation2 + $0x48] sm:$0xff]  ;;  %v538_v31 = vld [vmem:[#allocation2 + $0x58] sm:$0xff] }
 0x189   : > { %v639_v1 = vmul.f32 %v1974_v48, %v1974_v48 }
 0x18d   : > { %549 = vadd.xlane.f32.xlu1 %v1968_v45  ;;  %545 = vadd.xlane.f32.xlu0 %v1952_v37 }
 0x18e   : > { %553 = vadd.xlane.f32.xlu2 %v1954_v38 }
 0x195   : > { %557 = vadd.xlane.f32.xlu1 %v1970_v46  ;;  %555 = vadd.xlane.f32.xlu0 %v1962_v42 }
 0x196   : > { %559 = vadd.xlane.f32.xlu2 %v1948_v35 }
 0x19d   : > { %563 = vadd.xlane.f32.xlu1 %v1964_v43  ;;  %561 = vadd.xlane.f32.xlu0 %v1956_v39 }
 0x19e   : > { %565 = vadd.xlane.f32.xlu2 %v1972_v47 }
 0x1a5   : > { %569 = vadd.xlane.f32.xlu1 %v1958_v40  ;;  %567 = vadd.xlane.f32.xlu0 %v1950_v36 }
 0x1a6   : > { %571 = vadd.xlane.f32.xlu2 %v1966_v44 }
 0x1ad   : > { %573 = vadd.xlane.f32.xlu0 %v1974_v48  ;;  %640 = vadd.xlane.f32.xlu1 %v624_v50 }
 0x1ae   : > { %642 = vadd.xlane.f32.xlu2 %v625_v51 }
 0x1b5   : > { %644 = vadd.xlane.f32.xlu0 %v626_v52  ;;  %646 = vadd.xlane.f32.xlu1 %v627_v53 }
 0x1b6   : > { %648 = vadd.xlane.f32.xlu2 %v628_v54  ;;  %v540_v54 = vld [vmem:[#allocation2 + $0x68] sm:$0xff] }
 0x1bd   : > { %650 = vadd.xlane.f32.xlu0 %v629_v55  ;;  %652 = vadd.xlane.f32.xlu1 %v630_v56  ;;  %v539_v55 = vld [vmem:[#allocation2 + $0x60] sm:$0xff]  ;;  %v541_v56 = vld [vmem:[#allocation2 + $0x70] sm:$0xff] }
 0x1be   : > { %654 = vadd.xlane.f32.xlu2 %v631_v57 }
 0x1c5   : > { %656 = vadd.xlane.f32.xlu0 %v632_v58  ;;  %658 = vadd.xlane.f32.xlu1 %v633_v59 }
 0x1c6   : > { %660 = vadd.xlane.f32.xlu2 %v634_v60 }
 0x1cd   : > { %662 = vadd.xlane.f32.xlu0 %v635_v61  ;;  %664 = vadd.xlane.f32.xlu1 %v636_v62 }
 0x1ce   : > { %666 = vadd.xlane.f32.xlu2 %v637_v63  ;;  %v542_v63 = vld [vmem:[#allocation2 + $0x78] sm:$0xff] }
 0x1d5   : > { %668 = vadd.xlane.f32.xlu0 %v638_v0  ;;  %670 = vadd.xlane.f32.xlu1 %v639_v1  ;;  %v608_v0 = vld [vmem:[#allocation3] sm:$0xff]  ;;  %v609_v1 = vld [vmem:[#allocation3 + $0x8] sm:$0xff] }
 0x1f8   : > { %v548_v5 = vpop.xlane.xlu1 %547  ;;  %v544_v6 = vpop.xlane.xlu0 %543 }
 0x1f9   : > { %v577_v7 = vadd.f32 %v548_v5, %v529_v2  ;;  %v575_v8 = vadd.f32 %v544_v6, %v527_v3  ;;  %v552_v9 = vpop.xlane.xlu2 %551 }
 0x1fa   : > { %v579_v10 = vadd.f32 %v552_v9, %v531_v4  ;;  %v611_v9 = vld [vmem:[#allocation3 + $0x18] sm:$0xff] }
 0x1fb   : > { %594 = vst.msk [vmem:[#allocation2 + $0x10] sm:$0xff] %vm591_vm8, %v577_v7 }
 0x1fc   : > { %592 = vst.msk [vmem:[#allocation2] sm:$0xff] %vm591_vm8, %v575_v8  ;;  %v610_v8 = vld [vmem:[#allocation3 + $0x10] sm:$0xff] }
 0x1fd   : > { %596 = vst.msk [vmem:[#allocation2 + $0x20] sm:$0xff] %vm591_vm8, %v579_v10  ;;  %v612_v10 = vld [vmem:[#allocation3 + $0x20] sm:$0xff] }
 0x200   : > { %v550_v14 = vpop.xlane.xlu1 %549  ;;  %v546_v15 = vpop.xlane.xlu0 %545 }
 0x201   : > { %v578_v16 = vadd.f32 %v550_v14, %v530_v11  ;;  %v576_v17 = vadd.f32 %v546_v15, %v528_v12  ;;  %v554_v18 = vpop.xlane.xlu2 %553 }
 0x202   : > { %v580_v19 = vadd.f32 %v554_v18, %v532_v13  ;;  %v614_v18 = vld [vmem:[#allocation3 + $0x30] sm:$0xff] }
 0x203   : > { %595 = vst.msk [vmem:[#allocation2 + $0x18] sm:$0xff] %vm591_vm8, %v578_v16 }
 0x204   : > { %593 = vst.msk [vmem:[#allocation2 + $0x8] sm:$0xff] %vm591_vm8, %v576_v17  ;;  %v613_v17 = vld [vmem:[#allocation3 + $0x28] sm:$0xff] }
 0x205   : > { %597 = vst.msk [vmem:[#allocation2 + $0x28] sm:$0xff] %vm591_vm8, %v580_v19  ;;  %v615_v19 = vld [vmem:[#allocation3 + $0x38] sm:$0xff] }
 0x208   : > { %v558_v23 = vpop.xlane.xlu1 %557  ;;  %v556_v24 = vpop.xlane.xlu0 %555 }
 0x209   : > { %v582_v25 = vadd.f32 %v558_v23, %v534_v20  ;;  %v581_v26 = vadd.f32 %v556_v24, %v533_v21  ;;  %v560_v27 = vpop.xlane.xlu2 %559 }
 0x20a   : > { %v583_v28 = vadd.f32 %v560_v27, %v535_v22  ;;  %v617_v27 = vld [vmem:[#allocation3 + $0x48] sm:$0xff] }
 0x20b   : > { %599 = vst.msk [vmem:[#allocation2 + $0x38] sm:$0xff] %vm591_vm8, %v582_v25 }
 0x20c   : > { %598 = vst.msk [vmem:[#allocation2 + $0x30] sm:$0xff] %vm591_vm8, %v581_v26  ;;  %v616_v26 = vld [vmem:[#allocation3 + $0x40] sm:$0xff] }
 0x20d   : > { %600 = vst.msk [vmem:[#allocation2 + $0x40] sm:$0xff] %vm591_vm8, %v583_v28  ;;  %v618_v28 = vld [vmem:[#allocation3 + $0x50] sm:$0xff] }
 0x210   : > { %v564_v32 = vpop.xlane.xlu1 %563  ;;  %v562_v49 = vpop.xlane.xlu0 %561 }
 0x211   : > { %v585_v50 = vadd.f32 %v564_v32, %v537_v29  ;;  %v584_v51 = vadd.f32 %v562_v49, %v536_v30  ;;  %v566_v52 = vpop.xlane.xlu2 %565 }
 0x212   : > { %v586_v53 = vadd.f32 %v566_v52, %v538_v31  ;;  %v620_v52 = vld [vmem:[#allocation3 + $0x60] sm:$0xff] }
 0x213   : > { %602 = vst.msk [vmem:[#allocation2 + $0x50] sm:$0xff] %vm591_vm8, %v585_v50 }
 0x214   : > { %601 = vst.msk [vmem:[#allocation2 + $0x48] sm:$0xff] %vm591_vm8, %v584_v51  ;;  %v619_v51 = vld [vmem:[#allocation3 + $0x58] sm:$0xff] }
 0x215   : > { %603 = vst.msk [vmem:[#allocation2 + $0x58] sm:$0xff] %vm591_vm8, %v586_v53  ;;  %v621_v53 = vld [vmem:[#allocation3 + $0x68] sm:$0xff] }
 0x218   : > { %v570_v57 = vpop.xlane.xlu1 %569  ;;  %v568_v58 = vpop.xlane.xlu0 %567 }
 0x219   : > { %v588_v59 = vadd.f32 %v570_v57, %v540_v54  ;;  %v587_v60 = vadd.f32 %v568_v58, %v539_v55  ;;  %v572_v61 = vpop.xlane.xlu2 %571 }
 0x21a   : > { %v589_v62 = vadd.f32 %v572_v61, %v541_v56  ;;  %v623_v61 = vld [vmem:[#allocation3 + $0x78] sm:$0xff] }
 0x21b   : > { %605 = vst.msk [vmem:[#allocation2 + $0x68] sm:$0xff] %vm591_vm8, %v588_v59 }
 0x21c   : > { %604 = vst.msk [vmem:[#allocation2 + $0x60] sm:$0xff] %vm591_vm8, %v587_v60  ;;  %v622_v60 = vld [vmem:[#allocation3 + $0x70] sm:$0xff] }
 0x21d   : > { %606 = vst.msk [vmem:[#allocation2 + $0x70] sm:$0xff] %vm591_vm8, %v589_v62 }
 0x220   : > { %v574_v2 = vpop.xlane.xlu0 %573  ;;  %v641_v3 = vpop.xlane.xlu1 %640 }
 0x221   : > { %v590_v4 = vadd.f32 %v574_v2, %v542_v63  ;;  %v672_v5 = vadd.f32 %v641_v3, %v608_v0  ;;  %v643_v6 = vpop.xlane.xlu2 %642 }
 0x222   : > { %v673_v7 = vadd.f32 %v643_v6, %v609_v1 }
 0x223   : > { %607 = vst.msk [vmem:[#allocation2 + $0x78] sm:$0xff] %vm591_vm8, %v590_v4 }
 0x224   : > { %688 = vst.msk [vmem:[#allocation3] sm:$0xff] %vm591_vm8, %v672_v5 }
 0x225   : > { %689 = vst.msk [vmem:[#allocation3 + $0x8] sm:$0xff] %vm591_vm8, %v673_v7 }
 0x228   : > { %v645_v11 = vpop.xlane.xlu0 %644  ;;  %v647_v12 = vpop.xlane.xlu1 %646 }
 0x229   : > { %v674_v13 = vadd.f32 %v645_v11, %v610_v8  ;;  %v675_v14 = vadd.f32 %v647_v12, %v611_v9  ;;  %v649_v15 = vpop.xlane.xlu2 %648 }
 0x22a   : > { %v676_v16 = vadd.f32 %v649_v15, %v612_v10 }
 0x22b   : > { %690 = vst.msk [vmem:[#allocation3 + $0x10] sm:$0xff] %vm591_vm8, %v674_v13 }
 0x22c   : > { %691 = vst.msk [vmem:[#allocation3 + $0x18] sm:$0xff] %vm591_vm8, %v675_v14 }
 0x22d   : > { %692 = vst.msk [vmem:[#allocation3 + $0x20] sm:$0xff] %vm591_vm8, %v676_v16 }
 0x230   : > { %v651_v20 = vpop.xlane.xlu0 %650  ;;  %v653_v21 = vpop.xlane.xlu1 %652 }
 0x231   : > { %v677_v22 = vadd.f32 %v651_v20, %v613_v17  ;;  %v678_v23 = vadd.f32 %v653_v21, %v614_v18  ;;  %v655_v24 = vpop.xlane.xlu2 %654 }
 0x232   : > { %v679_v25 = vadd.f32 %v655_v24, %v615_v19 }
 0x233   : > { %693 = vst.msk [vmem:[#allocation3 + $0x28] sm:$0xff] %vm591_vm8, %v677_v22 }
 0x234   : > { %694 = vst.msk [vmem:[#allocation3 + $0x30] sm:$0xff] %vm591_vm8, %v678_v23 }
 0x235   : > { %695 = vst.msk [vmem:[#allocation3 + $0x38] sm:$0xff] %vm591_vm8, %v679_v25 }
 0x238   : > { %v657_v29 = vpop.xlane.xlu0 %656  ;;  %v659_v30 = vpop.xlane.xlu1 %658 }
 0x239   : > { %v680_v31 = vadd.f32 %v657_v29, %v616_v26  ;;  %v681_v32 = vadd.f32 %v659_v30, %v617_v27  ;;  %v661_v49 = vpop.xlane.xlu2 %660 }
 0x23a   : > { %v682_v50 = vadd.f32 %v661_v49, %v618_v28 }
 0x23b   : > { %696 = vst.msk [vmem:[#allocation3 + $0x40] sm:$0xff] %vm591_vm8, %v680_v31 }
 0x23c   : > { %697 = vst.msk [vmem:[#allocation3 + $0x48] sm:$0xff] %vm591_vm8, %v681_v32 }
 0x23d   : > { %698 = vst.msk [vmem:[#allocation3 + $0x50] sm:$0xff] %vm591_vm8, %v682_v50 }
 0x240   : > { %v663_v54 = vpop.xlane.xlu0 %662  ;;  %v665_v55 = vpop.xlane.xlu1 %664 }
 0x241   : > { %v683_v56 = vadd.f32 %v663_v54, %v619_v51  ;;  %v684_v57 = vadd.f32 %v665_v55, %v620_v52  ;;  %v667_v58 = vpop.xlane.xlu2 %666 }
 0x242   : > { %v685_v59 = vadd.f32 %v667_v58, %v621_v53 }
 0x243   : > { %699 = vst.msk [vmem:[#allocation3 + $0x58] sm:$0xff] %vm591_vm8, %v683_v56 }
 0x244   : > { %700 = vst.msk [vmem:[#allocation3 + $0x60] sm:$0xff] %vm591_vm8, %v684_v57 }
 0x245   : > { %701 = vst.msk [vmem:[#allocation3 + $0x68] sm:$0xff] %vm591_vm8, %v685_v59 }
 0x248   : > { %v669_v62 = vpop.xlane.xlu0 %668  ;;  %v671_v63 = vpop.xlane.xlu1 %670 }
 0x249   : > { %v686_v0 = vadd.f32 %v669_v62, %v622_v60  ;;  %v687_v1 = vadd.f32 %v671_v63, %v623_v61 }
 0x24b   : > { %702 = vst.msk [vmem:[#allocation3 + $0x70] sm:$0xff] %vm591_vm8, %v686_v0 }
 0x24c   : > { %703 = vst.msk [vmem:[#allocation3 + $0x78] sm:$0xff] %vm591_vm8, %v687_v1 }
 0x24d PF: > { %p704_p1 = scmp.eq.s32.totalorder %s1718_s17, 1 }
 0x24f   : > { %p705_p2 = pnand %p704_p1, %p483_p9 }
 0x251   : > { %p706_p3 = pneg %p705_p2 }
 0x253   : > { %p707_p4 = pnand %p706_p3, %p486_p12 }
 0x255   : > { %710 = sbr.rel (%p707_p4) target bundleno = 619 (0x26b), region = 48 }
 0x25a   : > { %vm711_vm9 = vcmask 31744   ;;  %v1752_v2 = vmov 0.0  }
 0x25b   : > { %712 = vst.msk [vmem:[%s2878_s4] sm:$0xff] %vm711_vm9, %v1752_v2 }
 0x25c   : > { %713 = vst.msk [vmem:[%s2878_s4 + $0x8] sm:$0xff] %vm711_vm9, %v1752_v2 }
 0x25d   : > { %714 = vst.msk [vmem:[%s2878_s4 + $0x10] sm:$0xff] %vm711_vm9, %v1752_v2 }
 0x25e   : > { %715 = vst.msk [vmem:[%s2878_s4 + $0x18] sm:$0xff] %vm711_vm9, %v1752_v2 }
 0x25f   : > { %716 = vst.msk [vmem:[%s2878_s4 + $0x20] sm:$0xff] %vm711_vm9, %v1752_v2 }
 0x260   : > { %717 = vst.msk [vmem:[%s2878_s4 + $0x28] sm:$0xff] %vm711_vm9, %v1752_v2 }
 0x261   : > { %718 = vst.msk [vmem:[%s2878_s4 + $0x30] sm:$0xff] %vm711_vm9, %v1752_v2 }
 0x262   : > { %719 = vst.msk [vmem:[%s2878_s4 + $0x38] sm:$0xff] %vm711_vm9, %v1752_v2 }
 0x263   : > { %720 = vst.msk [vmem:[%s2878_s4 + $0x40] sm:$0xff] %vm711_vm9, %v1752_v2 }
 0x264   : > { %721 = vst.msk [vmem:[%s2878_s4 + $0x48] sm:$0xff] %vm711_vm9, %v1752_v2 }
 0x265   : > { %722 = vst.msk [vmem:[%s2878_s4 + $0x50] sm:$0xff] %vm711_vm9, %v1752_v2 }
 0x266   : > { %723 = vst.msk [vmem:[%s2878_s4 + $0x58] sm:$0xff] %vm711_vm9, %v1752_v2 }
 0x267   : > { %724 = vst.msk [vmem:[%s2878_s4 + $0x60] sm:$0xff] %vm711_vm9, %v1752_v2 }
 0x268   : > { %725 = vst.msk [vmem:[%s2878_s4 + $0x68] sm:$0xff] %vm711_vm9, %v1752_v2 }
 0x269   : > { %726 = vst.msk [vmem:[%s2878_s4 + $0x70] sm:$0xff] %vm711_vm9, %v1752_v2 }
 0x26a   : > { %727 = vst.msk [vmem:[%s2878_s4 + $0x78] sm:$0xff] %vm711_vm9, %v1752_v2 }
 0x26b PF: > { %p1487_p5 = scmp.ne.s32.totalorder %s1718_s17, 1 }
 0x26d   : > { %730 = sbr.rel (%p1487_p5) target bundleno = 985 (0x3d9), region = 52 }
 0x272   : > { %v735_v3 = vld [vmem:[#allocation2 + $0x20] sm:$0xff]  ;;  %v1753_v5 = vmov 0   ;;  %v733_v8 = vld [vmem:[#allocation2 + $0x10] sm:$0xff]  ;;  %v736_v17 = vld [vmem:[#allocation2 + $0x28] sm:$0xff] }
 0x273   : > { %v767_v4 = vld [vmem:[#allocation3 + $0x20] sm:$0xff]  ;;  %1647 = vset.pattern.permute.xlu2 %v1753_v5  ;;  %1646 = vset.pattern.permute.xlu1 %v1753_v5  ;;  %v2161_v6 = vmul.f32 0.0009765625, %v735_v3  ;;  %v765_v9 = vld [vmem:[#allocation3 + $0x10] sm:$0xff]  ;;  %v2163_v10 = vmul.f32 0.0009765625, %v733_v8  ;;  %v768_v18 = vld [vmem:[#allocation3 + $0x28] sm:$0xff]  ;;  %v2171_v20 = vmul.f32 0.0009765625, %v736_v17 }
 0x274   : > { %v783_v7 = vmul.f32 0.0009765625, %v767_v4  ;;  %1645 = vset.pattern.permute.xlu0 %v1753_v5  ;;  %v781_v11 = vmul.f32 0.0009765625, %v765_v9  ;;  %v731_v12 = vld [vmem:[#allocation2] sm:$0xff]  ;;  %v784_v21 = vmul.f32 0.0009765625, %v768_v18  ;;  %v734_v22 = vld [vmem:[#allocation2 + $0x18] sm:$0xff]  ;;  %v732_v28 = vld [vmem:[#allocation2 + $0x8] sm:$0xff] }
 0x275   : > { %v763_v13 = vld [vmem:[#allocation3] sm:$0xff]  ;;  %v799_v14 = vmul.f32 %v2161_v6, %v2161_v6  ;;  %v2167_v15 = vmul.f32 0.0009765625, %v731_v12  ;;  %v797_v19 = vmul.f32 %v2163_v10, %v2163_v10  ;;  %v766_v23 = vld [vmem:[#allocation3 + $0x18] sm:$0xff]  ;;  %v2175_v26 = vmul.f32 0.0009765625, %v734_v22  ;;  %v764_v29 = vld [vmem:[#allocation3 + $0x8] sm:$0xff] }
 0x276   : > { %v779_v16 = vmul.f32 0.0009765625, %v763_v13  ;;  %v782_v27 = vmul.f32 0.0009765625, %v766_v23  ;;  %v800_v31 = vmul.f32 %v2171_v20, %v2171_v20  ;;  %v2179_v32 = vmul.f32 0.0009765625, %v732_v28  ;;  %v739_v50 = vld [vmem:[#allocation2 + $0x40] sm:$0xff]  ;;  %v738_v62 = vld [vmem:[#allocation2 + $0x38] sm:$0xff]  ;;  %v737_v4 = vld [vmem:[#allocation2 + $0x30] sm:$0xff] }
 0x277   : > { %v815_v24 = vsub.f32 %v783_v7, %v799_v14  ;;  %v795_v25 = vmul.f32 %v2167_v15, %v2167_v15  ;;  %v813_v30 = vsub.f32 %v781_v11, %v797_v19  ;;  %v780_v49 = vmul.f32 0.0009765625, %v764_v29  ;;  %v771_v51 = vld [vmem:[#allocation3 + $0x40] sm:$0xff]  ;;  %v770_v1 = vld [vmem:[#allocation3 + $0x38] sm:$0xff]  ;;  %v769_v13 = vld [vmem:[#allocation3 + $0x30] sm:$0xff] }
 0x278   : > { %v798_v54 = vmul.f32 %v2175_v26, %v2175_v26  ;;  %v2185_v55 = vmul.f32 0.0009765625, %v739_v50  ;;  %v816_v57 = vsub.f32 %v784_v21, %v800_v31  ;;  %v796_v58 = vmul.f32 %v2179_v32, %v2179_v32  ;;  %v836_v40 = vld [vmem:[%s2876_s2 + $0x48] sm:$0xff] }
 0x279   : > { %v2181_v52 = vadd.f32 1e-05, %v815_v24  ;;  %v811_v53 = vsub.f32 %v779_v16, %v795_v25  ;;  %v2187_v56 = vadd.f32 1e-05, %v813_v30  ;;  %v787_v61 = vmul.f32 0.0009765625, %v771_v51 }
 0x27a   : > { %v814_v60 = vsub.f32 %v782_v27, %v798_v54  ;;  %v2195_v63 = vadd.f32 1e-05, %v816_v57  ;;  %v812_v0 = vsub.f32 %v780_v49, %v796_v58  ;;  %v803_v3 = vmul.f32 %v2185_v55, %v2185_v55 }
 0x27b   : > { %1648 = vrsqrt.f32 %v2181_v52  ;;  %v2192_v59 = vadd.f32 1e-05, %v811_v53  ;;  %v2205_v7 = vmul.f32 0.0009765625, %v738_v62  ;;  %v786_v9 = vmul.f32 0.0009765625, %v770_v1 }
 0x27c   : > { %1650 = vrsqrt.f32 %v2187_v56  ;;  %v2198_v2 = vadd.f32 1e-05, %v814_v60  ;;  %v2203_v5 = vadd.f32 1e-05, %v812_v0  ;;  %v819_v8 = vsub.f32 %v787_v61, %v803_v3 }
 0x27d   : > { %1652 = vrsqrt.f32 %v2192_v59  ;;  %v802_v11 = vmul.f32 %v2205_v7, %v2205_v7  ;;  %v2211_v12 = vmul.f32 0.0009765625, %v737_v4  ;;  %vm905_vm10 = vweird.f32 %v2181_v52 }
 0x27e   : > { %1654 = vrsqrt.f32 %v2195_v63  ;;  %vm885_vm11 = vweird.f32 %v2187_v56  ;;  %vm865_vm12 = vweird.f32 %v2192_v59  ;;  %v2218_v16 = vadd.f32 1e-05, %v819_v8 }
 0x27f   : > { %1656 = vrsqrt.f32 %v2198_v2  ;;  %vm915_vm13 = vweird.f32 %v2195_v63  ;;  %vm895_vm14 = vweird.f32 %v2198_v2  ;;  %v818_v19 = vsub.f32 %v786_v9, %v802_v11 }
 0x280   : > { %1658 = vrsqrt.f32 %v2203_v5  ;;  %vm875_vm15 = vweird.f32 %v2203_v5  ;;  %v2232_v23 = vmul.f32 0.0009765625, %v769_v13  ;;  %v2236_v24 = vmul.f32 %v2211_v12, %v2211_v12  ;;  %v831_v13 = vld [vmem:[%s2876_s2 + $0x20] sm:$0xff] }
 0x281   : > { %v2213_v14 = vpop.eup %1648  ;;  %1660 = vrsqrt.f32 %v2218_v16  ;;  %v2244_v29 = vadd.f32 1e-05, %v818_v19 }
 0x282   : > { %v2220_v17 = vpop.eup %1650  ;;  %v900_v18 = vmul.f32 %v2213_v14, %v2181_v52  ;;  %vm906_vm1 = vweird.f32 %v2213_v14  ;;  %v817_v61 = vsub.f32 %v2232_v23, %v2236_v24  ;;  %v744_v24 = vld [vmem:[#allocation2 + $0x68] sm:$0xff] }
 0x283   : > { %v2226_v21 = vpop.eup %1652  ;;  %v880_v22 = vmul.f32 %v2220_v17, %v2187_v56  ;;  %vm886_vm0 = vweird.f32 %v2220_v17  ;;  %1662 = vrsqrt.f32 %v2244_v29  ;;  %vm2272_vm4 = vmor %vm905_vm10, %vm906_vm1 }
 0x284   : > { %v2238_v25 = vpop.eup %1654  ;;  %v901_v27 = vmul.f32 %v2213_v14, %v900_v18  ;;  %v860_v28 = vmul.f32 %v2226_v21, %v2192_v59  ;;  %vm866_vm2 = vweird.f32 %v2226_v21  ;;  %vm2286_vm6 = vmor %vm885_vm11, %vm886_vm0 }
 0x285   : > { %v2246_v30 = vpop.eup %1656  ;;  %v881_v31 = vmul.f32 %v2220_v17, %v880_v22  ;;  %v910_v49 = vmul.f32 %v2238_v25, %v2195_v63  ;;  %vm916_vm3 = vweird.f32 %v2238_v25  ;;  %vm2300_vm7 = vmor %vm865_vm12, %vm866_vm2  ;;  %vm945_vm12 = vweird.f32 %v2218_v16  ;;  %v745_v63 = vld [vmem:[#allocation2 + $0x70] sm:$0xff] }
 0x286   : > { %v2253_v50 = vpop.eup %1658  ;;  %v902_v51 = vmul.f32 0.5, %v901_v27  ;;  %v861_v53 = vmul.f32 %v2226_v21, %v860_v28  ;;  %v890_v54 = vmul.f32 %v2246_v30, %v2198_v2  ;;  %vm896_vm5 = vweird.f32 %v2246_v30  ;;  %v829_v28 = vld [vmem:[%s2876_s2 + $0x10] sm:$0xff]  ;;  %vm2316_vm9 = vmor %vm915_vm13, %vm916_vm3 }
 0x287   : > { %v882_v57 = vmul.f32 0.5, %v881_v31  ;;  %v911_v58 = vmul.f32 %v2238_v25, %v910_v49  ;;  %v870_v60 = vmul.f32 %v2253_v50, %v2203_v5  ;;  %v2266_v3 = vpop.eup %1660  ;;  %vm876_vm8 = vweird.f32 %v2253_v50  ;;  %vm2331_vm10 = vmor %vm895_vm14, %vm896_vm5  ;;  %v830_v5 = vld [vmem:[%s2876_s2 + $0x18] sm:$0xff] }
 0x288   : > { %v903_v62 = vsub.f32 1.5, %v902_v51  ;;  %v862_v0 = vmul.f32 0.5, %v861_v53  ;;  %v891_v1 = vmul.f32 %v2246_v30, %v890_v54  ;;  %v940_v27 = vmul.f32 %v2266_v3, %v2218_v16  ;;  %v827_v54 = vld [vmem:[%s2876_s2] sm:$0xff]  ;;  %vm2347_vm11 = vmor %vm875_vm15, %vm876_vm8 }
 0x289   : > { %v883_v8 = vsub.f32 1.5, %v882_v57  ;;  %v912_v9 = vmul.f32 0.5, %v911_v58  ;;  %v871_v11 = vmul.f32 %v2253_v50, %v870_v60  ;;  %vm935_vm13 = vweird.f32 %v2244_v29  ;;  %v743_v16 = vld [vmem:[#allocation2 + $0x60] sm:$0xff] }
 0x28a   : > { %v904_v18 = vmul.f32 %v2213_v14, %v903_v62  ;;  %v863_v19 = vsub.f32 1.5, %v862_v0  ;;  %v892_v22 = vmul.f32 0.5, %v891_v1  ;;  %v941_v60 = vmul.f32 %v2266_v3, %v940_v27  ;;  %v742_v62 = vld [vmem:[#allocation2 + $0x58] sm:$0xff] }
 0x28b   : > { %v884_v31 = vmul.f32 %v2220_v17, %v883_v8  ;;  %v913_v49 = vsub.f32 1.5, %v912_v9  ;;  %v872_v51 = vmul.f32 0.5, %v871_v11  ;;  %v774_v8 = vld [vmem:[#allocation3 + $0x58] sm:$0xff]  ;;  %v2335_v9 = vpop.eup %1662  ;;  %v2364_v27 = vmul.f32 0.0009765625, %v742_v62 }
 0x28c   : > { %v908_v53 = vsel %vm2272_vm4, %v2213_v14, %v904_v18  ;;  %v864_v57 = vmul.f32 %v2226_v21, %v863_v19  ;;  %v893_v58 = vsub.f32 1.5, %v892_v22  ;;  %v942_v18 = vmul.f32 0.5, %v941_v60  ;;  %v832_v19 = vld [vmem:[%s2876_s2 + $0x28] sm:$0xff] }
 0x28d   : > { %v2321_v0 = vmul.f32 %v908_v53, %v831_v13  ;;  %v888_v14 = vsel %vm2286_vm6, %v2220_v17, %v884_v31  ;;  %v914_v1 = vmul.f32 %v2238_v25, %v913_v49  ;;  %v873_v4 = vsub.f32 1.5, %v872_v51  ;;  %v741_v49 = vld [vmem:[#allocation2 + $0x50] sm:$0xff] }
 0x28e   : > { %v2337_v11 = vmul.f32 %v888_v14, %v829_v28  ;;  %v868_v17 = vsel %vm2300_vm7, %v2226_v21, %v864_v57  ;;  %v894_v13 = vmul.f32 %v2246_v30, %v893_v58  ;;  %v943_v31 = vsub.f32 1.5, %v942_v18  ;;  %v773_v51 = vld [vmem:[#allocation3 + $0x50] sm:$0xff] }
 0x28f   : > { %1105 = vperm.xlu2 %1647, %v2321_v0   ;;  %v2352_v52 = vmul.f32 %v868_v17, %v827_v54  ;;  %v918_v21 = vsel %vm2316_vm9, %v2238_v25, %v914_v1  ;;  %v874_v22 = vmul.f32 %v2253_v50, %v873_v4  ;;  %v790_v56 = vmul.f32 0.0009765625, %v774_v8  ;;  %v828_v25 = vld [vmem:[%s2876_s2 + $0x8] sm:$0xff]  ;;  %v777_v4 = vld [vmem:[#allocation3 + $0x70] sm:$0xff] }
 0x290   : > { %1095 = vperm.xlu1 %1646, %v2337_v11   ;;  %v898_v28 = vsel %vm2331_vm10, %v2246_v30, %v894_v13  ;;  %v930_v54 = vmul.f32 %v2335_v9, %v2244_v29  ;;  %v740_v30 = vld [vmem:[#allocation2 + $0x48] sm:$0xff]  ;;  %v2381_v57 = vmul.f32 %v918_v21, %v832_v19  ;;  %vm946_vm14 = vweird.f32 %v2266_v3 }
 0x291   : > { %1085 = vperm.xlu0 %1645, %v2352_v52   ;;  %v878_v53 = vsel %vm2347_vm11, %v2253_v50, %v874_v22  ;;  %v2383_v59 = vmul.f32 %v898_v28, %v830_v5  ;;  %v2389_v58 = vadd.f32 1e-05, %v817_v61  ;;  %v806_v60 = vmul.f32 %v2364_v27, %v2364_v27  ;;  %v772_v1 = vld [vmem:[#allocation3 + $0x48] sm:$0xff]  ;;  %vm2404_vm15 = vmor %vm945_vm12, %vm946_vm14 }
 0x292   : > { %v931_v50 = vmul.f32 %v2335_v9, %v930_v54  ;;  %v2394_v62 = vmul.f32 0.0009765625, %v741_v49  ;;  %v789_v14 = vmul.f32 0.0009765625, %v773_v51  ;;  %v2396_v8 = vmul.f32 %v878_v53, %v828_v25  ;;  %v776_v19 = vld [vmem:[#allocation3 + $0x68] sm:$0xff] }
 0x293   : > { %v944_v17 = vmul.f32 %v2266_v3, %v943_v31  ;;  %1664 = vrsqrt.f32 %v2389_v58  ;;  %v2400_v23 = vmul.f32 0.0009765625, %v740_v30  ;;  %vm936_vm1 = vweird.f32 %v2335_v9 }
 0x294   : > { %v932_v13 = vmul.f32 0.5, %v931_v50  ;;  %v822_v2 = vsub.f32 %v790_v56, %v806_v60  ;;  %v805_v18 = vmul.f32 %v2394_v62, %v2394_v62  ;;  %v788_v21 = vmul.f32 0.0009765625, %v772_v1  ;;  %v835_v56 = vld [vmem:[%s2876_s2 + $0x40] sm:$0xff]  ;;  %vm2431_vm0 = vmor %vm935_vm13, %vm936_vm1 }
 0x295   : > { %v804_v5 = vmul.f32 %v2400_v23, %v2400_v23  ;;  %v2413_v22 = vmul.f32 0.0009765625, %v745_v63  ;;  %v793_v28 = vmul.f32 0.0009765625, %v777_v4  ;;  %v2418_v25 = vmul.f32 0.0009765625, %v744_v24  ;;  %v775_v63 = vld [vmem:[#allocation3 + $0x60] sm:$0xff] }
 0x296   : > { %v933_v31 = vsub.f32 1.5, %v932_v13  ;;  %v2416_v49 = vadd.f32 1e-05, %v822_v2  ;;  %v821_v51 = vsub.f32 %v789_v14, %v805_v18  ;;  %v948_v53 = vsel %vm2404_vm15, %v2266_v3, %v944_v17  ;;  %v834_v14 = vld [vmem:[%s2876_s2 + $0x38] sm:$0xff] }
 0x297   : > { %1110 = vperm.xlu2 %1647, %v2381_v57   ;;  %v820_v30 = vsub.f32 %v788_v21, %v804_v5  ;;  %v809_v50 = vmul.f32 %v2413_v22, %v2413_v22  ;;  %v792_v60 = vmul.f32 0.0009765625, %v776_v19  ;;  %v2445_v1 = vmul.f32 0.0009765625, %v743_v16  ;;  %v746_v19 = vld [vmem:[#allocation2 + $0x78] sm:$0xff] }
 0x298   : > { %1100 = vperm.xlu1 %1646, %v2383_v59   ;;  %v934_v3 = vmul.f32 %v2335_v9, %v933_v31  ;;  %1666 = vrsqrt.f32 %v2416_v49  ;;  %v2443_v29 = vadd.f32 1e-05, %v821_v51  ;;  %v808_v61 = vmul.f32 %v2418_v25, %v2418_v25 }
 0x299   : > { %1090 = vperm.xlu0 %1645, %v2396_v8   ;;  %v1665_v4 = vpop.eup %1664  ;;  %v2447_v17 = vadd.f32 1e-05, %v820_v30  ;;  %v825_v24 = vsub.f32 %v793_v28, %v809_v50  ;;  %v2451_v13 = vmul.f32 %v948_v53, %v835_v56  ;;  %v791_v5 = vmul.f32 0.0009765625, %v775_v63  ;;  %v778_v28 = vld [vmem:[#allocation3 + $0x78] sm:$0xff] }
 0x29a   : > { %v938_v2 = vsel %vm2431_vm0, %v2335_v9, %v934_v3  ;;  %v920_v18 = vmul.f32 %v1665_v4, %v2389_v58  ;;  %1668 = vrsqrt.f32 %v2443_v29  ;;  %v824_v51 = vsub.f32 %v792_v60, %v808_v61 }
 0x29b   : > { %v2458_v21 = vmul.f32 %v938_v2, %v834_v14  ;;  %1670 = vrsqrt.f32 %v2447_v17  ;;  %v2461_v31 = vadd.f32 1e-05, %v825_v24  ;;  %v807_v56 = vmul.f32 %v2445_v1, %v2445_v1  ;;  %v838_v2 = vld [vmem:[%s2876_s2 + $0x58] sm:$0xff] }
 0x29c   : > { %v921_v16 = vmul.f32 %v1665_v4, %v920_v18  ;;  %vm925_vm2 = vweird.f32 %v2389_v58  ;;  %vm926_vm3 = vweird.f32 %v1665_v4  ;;  %v2466_v9 = vmul.f32 0.0009765625, %v746_v19 }
 0x29d   : > { %1672 = vrsqrt.f32 %v2461_v31  ;;  %v2470_v30 = vadd.f32 1e-05, %v824_v51  ;;  %v794_v50 = vmul.f32 0.0009765625, %v778_v28  ;;  %v823_v14 = vsub.f32 %v791_v5, %v807_v56  ;;  %vm2484_vm4 = vmor %vm925_vm2, %vm926_vm3  ;;  %v833_v28 = vld [vmem:[%s2876_s2 + $0x30] sm:$0xff] }
 0x29e   : > { %v1667_v53 = vpop.eup %1666  ;;  %v922_v54 = vmul.f32 0.5, %v921_v16  ;;  %v810_v24 = vmul.f32 %v2466_v9, %v2466_v9  ;;  %vm975_vm5 = vweird.f32 %v2416_v49  ;;  %vm965_vm6 = vweird.f32 %v2443_v29 }
 0x29f   : > { %1125 = vperm.xlu2 %1647, %v2451_v13   ;;  %v970_v60 = vmul.f32 %v1667_v53, %v2416_v49  ;;  %1674 = vrsqrt.f32 %v2470_v30  ;;  %v2491_v5 = vadd.f32 1e-05, %v823_v14  ;;  %vm976_vm7 = vweird.f32 %v1667_v53 }
 0x2a0   : > { %1120 = vperm.xlu1 %1646, %v2458_v21   ;;  %v2474_v3 = vpop.eup %1668  ;;  %v923_v63 = vsub.f32 1.5, %v922_v54  ;;  %v826_v51 = vsub.f32 %v794_v50, %v810_v24  ;;  %vm2515_vm9 = vmor %vm975_vm5, %vm976_vm7  ;;  %vm955_vm10 = vweird.f32 %v2447_v17  ;;  %vm1005_vm13 = vweird.f32 %v2461_v31 }
 0x2a1   : > { %v2479_v61 = vpop.eup %1670  ;;  %v971_v18 = vmul.f32 %v1667_v53, %v970_v60  ;;  %v960_v19 = vmul.f32 %v2474_v3, %v2443_v29  ;;  %1676 = vrsqrt.f32 %v2491_v5  ;;  %vm966_vm8 = vweird.f32 %v2474_v3 }
 0x2a2   : > { %v924_v16 = vmul.f32 %v1665_v4, %v923_v63  ;;  %v950_v58 = vmul.f32 %v2479_v61, %v2447_v17  ;;  %v2507_v44 = vadd.f32 1e-05, %v826_v51  ;;  %vm956_vm11 = vweird.f32 %v2479_v61  ;;  %vm2532_vm12 = vmor %vm965_vm6, %vm966_vm8 }
 0x2a3   : > { %v972_v56 = vmul.f32 0.5, %v971_v18  ;;  %v961_v54 = vmul.f32 %v2474_v3, %v960_v19  ;;  %v2501_v60 = vpop.eup %1672  ;;  %vm2548_vm15 = vmor %vm955_vm10, %vm956_vm11  ;;  %vm995_vm1 = vweird.f32 %v2470_v30  ;;  %vm1391_vm11 = vcmask 31744  }
 0x2a4   : > { %v928_v14 = vsel %vm2484_vm4, %v1665_v4, %v924_v16  ;;  %v951_v63 = vmul.f32 %v2479_v61, %v950_v58  ;;  %v1000_v18 = vmul.f32 %v2501_v60, %v2461_v31  ;;  %1678 = vrsqrt.f32 %v2507_v44 }
 0x2a5   : > { %v2509_v48 = vmul.f32 %v928_v14, %v833_v28  ;;  %v973_v50 = vsub.f32 1.5, %v972_v56  ;;  %v962_v24 = vmul.f32 0.5, %v961_v54  ;;  %v1675_v19 = vpop.eup %1674  ;;  %vm1006_vm14 = vweird.f32 %v2501_v60 }
 0x2a6   : > { %v952_v4 = vmul.f32 0.5, %v951_v63  ;;  %v1001_v49 = vmul.f32 %v2501_v60, %v1000_v18  ;;  %v990_v58 = vmul.f32 %v1675_v19, %v2470_v30  ;;  %v837_v63 = vld [vmem:[%s2876_s2 + $0x50] sm:$0xff]  ;;  %vm996_vm0 = vweird.f32 %v1675_v19  ;;  %vm2573_vm2 = vmor %vm1005_vm13, %vm1006_vm14 }
 0x2a7   : > { %1115 = vperm.xlu0 %1645, %v2509_v48   ;;  %v974_v28 = vmul.f32 %v1667_v53, %v973_v50  ;;  %v963_v16 = vsub.f32 1.5, %v962_v24  ;;  %v1677_v54 = vpop.eup %1676  ;;  %vm997_vm3 = vmor %vm995_vm1, %vm996_vm0  ;;  %vm985_vm4 = vweird.f32 %v2491_v5  ;;  %vm1015_vm7 = vweird.f32 %v2507_v44 }
 0x2a8   : > { %v953_v56 = vsub.f32 1.5, %v952_v4  ;;  %v1002_v24 = vmul.f32 0.5, %v1001_v49  ;;  %v991_v18 = vmul.f32 %v1675_v19, %v990_v58  ;;  %vm986_vm5 = vweird.f32 %v1677_v54 }
 0x2a9   : > { %v978_v14 = vsel %vm2515_vm9, %v1667_v53, %v974_v28  ;;  %v964_v50 = vmul.f32 %v2474_v3, %v963_v16  ;;  %v980_v28 = vmul.f32 %v1677_v54, %v2491_v5  ;;  %vm987_vm6 = vmor %vm985_vm4, %vm986_vm5 }
 0x2aa   : > { %v2552_v4 = vmul.f32 %v978_v14, %v838_v2  ;;  %v954_v53 = vmul.f32 %v2479_v61, %v953_v56  ;;  %v1003_v16 = vsub.f32 1.5, %v1002_v24  ;;  %v992_v47 = vmul.f32 0.5, %v991_v18  ;;  %v1679_v49 = vpop.eup %1678  ;;  %v841_v14 = vld [vmem:[%s2876_s2 + $0x70] sm:$0xff] }
 0x2ab   : > { %v968_v17 = vsel %vm2532_vm12, %v2474_v3, %v964_v50  ;;  %v981_v3 = vmul.f32 %v1677_v54, %v980_v28  ;;  %vm1016_vm8 = vweird.f32 %v1679_v49  ;;  %v1052_v56 = vmul.f32 %v2396_v8, %v2179_v32  ;;  %v842_v32 = vld [vmem:[%s2876_s2 + $0x78] sm:$0xff] }
 0x2ac   : > { %1140 = vperm.xlu2 %1647, %v2552_v4   ;;  %v2564_v2 = vmul.f32 %v968_v17, %v837_v63  ;;  %v958_v58 = vsel %vm2548_vm15, %v2479_v61, %v954_v53  ;;  %v1004_v63 = vmul.f32 %v2501_v60, %v1003_v16  ;;  %v993_v50 = vsub.f32 1.5, %v992_v47  ;;  %v840_v47 = vld [vmem:[%s2876_s2 + $0x68] sm:$0xff]  ;;  %v839_v17 = vld [vmem:[%s2876_s2 + $0x60] sm:$0xff]  ;;  %vm1017_vm9 = vmor %vm1015_vm7, %vm1016_vm8 }
 0x2ad   : > { %v2577_v51 = vmul.f32 %v958_v58, %v836_v40  ;;  %v1010_v61 = vmul.f32 %v1679_v49, %v2507_v44  ;;  %v982_v31 = vmul.f32 0.5, %v981_v3  ;;  %v1035_v44 = vld [vmem:[%s2877_s3] sm:$0xff] }
 0x2ae   : > { %1135 = vperm.xlu1 %1646, %v2564_v2   ;;  %v1008_v29 = vsel %vm2573_vm2, %v2501_v60, %v1004_v63  ;;  %v994_v24 = vmul.f32 %v1675_v19, %v993_v50  ;;  %v1051_v63 = vmul.f32 %v2352_v52, %v2167_v15  ;;  %v1039_v15 = vld [vmem:[%s2877_s3 + $0x20] sm:$0xff]  ;;  %v1054_v52 = vmul.f32 %v2383_v59, %v2175_v26  ;;  %v1041_v59 = vld [vmem:[%s2877_s3 + $0x30] sm:$0xff] }
 0x2af   : > { %1130 = vperm.xlu0 %1645, %v2577_v51   ;;  %v1011_v18 = vmul.f32 %v1679_v49, %v1010_v61  ;;  %v2595_v40 = vmul.f32 %v1008_v29, %v841_v14  ;;  %v983_v30 = vsub.f32 1.5, %v982_v31  ;;  %v1055_v31 = vmul.f32 %v2321_v0, %v2161_v6  ;;  %v1037_v6 = vld [vmem:[%s2877_s3 + $0x10] sm:$0xff] }
 0x2b0   : > { %v998_v53 = vsel %vm997_vm3, %v1675_v19, %v994_v24  ;;  %v1036_v19 = vld [vmem:[%s2877_s3 + $0x8] sm:$0xff]  ;;  %v1067_v50 = vsub.f32 %v1035_v44, %v1051_v63  ;;  %v1053_v29 = vmul.f32 %v2337_v11, %v2163_v10  ;;  %v1042_v10 = vld [vmem:[%s2877_s3 + $0x38] sm:$0xff]  ;;  %v1057_v26 = vmul.f32 %v2509_v48, %v2211_v12  ;;  %v1045_v48 = vld [vmem:[%s2877_s3 + $0x50] sm:$0xff] }
 0x2b1   : > { %v1012_v28 = vmul.f32 0.5, %v1011_v18  ;;  %v1032_v5 = vmul.f32 %v998_v53, %v840_v47  ;;  %v984_v16 = vmul.f32 %v1677_v54, %v983_v30  ;;  %v1071_v47 = vsub.f32 %v1039_v15, %v1055_v31 }
 0x2b2   : > { %v1069_v24 = vsub.f32 %v1037_v6, %v1053_v29  ;;  %v1058_v18 = vmul.f32 %v2458_v21, %v2205_v7  ;;  %v1056_v11 = vmul.f32 %v2381_v57, %v2171_v20  ;;  %v1040_v7 = vld [vmem:[%s2877_s3 + $0x28] sm:$0xff]  ;;  %v1073_v21 = vsub.f32 %v1041_v59, %v1057_v26 }
 0x2b3   : > { %v1013_v60 = vsub.f32 1.5, %v1012_v28  ;;  %v988_v58 = vsel %vm987_vm6, %v1677_v54, %v984_v16  ;;  %v1068_v54 = vsub.f32 %v1036_v19, %v1052_v56  ;;  %v1061_v28 = vmul.f32 %v2564_v2, %v2394_v62  ;;  %v1044_v57 = vld [vmem:[%s2877_s3 + $0x48] sm:$0xff]  ;;  %v1043_v62 = vld [vmem:[%s2877_s3 + $0x40] sm:$0xff] }
 0x2b4   : > { %1155 = vperm.xlu2 %1647, %v2595_v40   ;;  %v1031_v3 = vmul.f32 %v988_v58, %v839_v17  ;;  %v1074_v30 = vsub.f32 %v1042_v10, %v1058_v18  ;;  %v1072_v53 = vsub.f32 %v1040_v7, %v1056_v11  ;;  %v1060_v20 = vmul.f32 %v2577_v51, %v2400_v23  ;;  %v1048_v23 = vld [vmem:[%s2877_s3 + $0x68] sm:$0xff]  ;;  %v1047_v51 = vld [vmem:[%s2877_s3 + $0x60] sm:$0xff] }
 0x2b5   : > { %v1014_v14 = vmul.f32 %v1679_v49, %v1013_v60  ;;  %v1059_v12 = vmul.f32 %v2451_v13, %v2185_v55  ;;  %v1077_v17 = vsub.f32 %v1045_v48, %v1061_v28  ;;  %v1064_v60 = vmul.f32 %v1032_v5, %v2418_v25  ;;  %v1046_v25 = vld [vmem:[%s2877_s3 + $0x58] sm:$0xff] }
 0x2b6   : > { %1150 = vperm.xlu1 %1646, %v1032_v5   ;;  %v1076_v2 = vsub.f32 %v1044_v57, %v1060_v20  ;;  %v1063_v55 = vmul.f32 %v1031_v3, %v2445_v1  ;;  %v1062_v13 = vmul.f32 %v2552_v4, %v2364_v27  ;;  %v1065_v1 = vmul.f32 %v2595_v40, %v2413_v22  ;;  %v1050_v27 = vld [vmem:[%s2877_s3 + $0x78] sm:$0xff]  ;;  %v1049_v4 = vld [vmem:[%s2877_s3 + $0x70] sm:$0xff] }
 0x2b7   : > { %1145 = vperm.xlu0 %1645, %v1031_v3   ;;  %v1018_v8 = vsel %vm1017_vm9, %v1679_v49, %v1014_v14  ;;  %v1038_v49 = vld [vmem:[%s2877_s3 + $0x18] sm:$0xff]  ;;  %v1075_v16 = vsub.f32 %v1043_v62, %v1059_v12  ;;  %v1080_v58 = vsub.f32 %v1048_v23, %v1064_v60 }
 0x2b8   : > { %v1034_v61 = vmul.f32 %v1018_v8, %v842_v32  ;;  %v1070_v0 = vsub.f32 %v1038_v49, %v1054_v52  ;;  %v1079_v5 = vsub.f32 %v1047_v51, %v1063_v55  ;;  %v1078_v56 = vsub.f32 %v1046_v25, %v1062_v13 }
 0x2b9   : > { %v1081_v14 = vsub.f32 %v1049_v4, %v1065_v1 }
 0x2ba   : > { %v1066_v19 = vmul.f32 %v1034_v61, %v2466_v9 }
 0x2bc   : > { %1186 = vperm.xlu2 %1647, %v1068_v54   ;;  %v1082_v3 = vsub.f32 %v1050_v27, %v1066_v19 }
 0x2be   : > { %1181 = vperm.xlu1 %1646, %v1067_v50  }
 0x2bf   : > { %1160 = vperm.xlu0 %1645, %v1034_v61  }
 0x2c4   : > { %1201 = vperm.xlu2 %1647, %v1071_v47  }
 0x2c6   : > { %1196 = vperm.xlu1 %1646, %v1070_v0  }
 0x2c7   : > { %1191 = vperm.xlu0 %1645, %v1069_v24  }
 0x2cc   : > { %1216 = vperm.xlu2 %1647, %v1074_v30  }
 0x2ce   : > { %1211 = vperm.xlu1 %1646, %v1073_v21  }
 0x2cf   : > { %1206 = vperm.xlu0 %1645, %v1072_v53  }
 0x2d4   : > { %1231 = vperm.xlu2 %1647, %v1077_v17  }
 0x2d6   : > { %1226 = vperm.xlu1 %1646, %v1076_v2  }
 0x2d7   : > { %1221 = vperm.xlu0 %1645, %v1075_v16  }
 0x2dc   : > { %1246 = vperm.xlu2 %1647, %v1080_v58  }
 0x2de   : > { %1241 = vperm.xlu1 %1646, %v1079_v5  }
 0x2df   : > { %1236 = vperm.xlu0 %1645, %v1078_v56  }
 0x2e6   : > { %1256 = vperm.xlu1 %1646, %v1082_v3  }
 0x2e7   : > { %1251 = vperm.xlu0 %1645, %v1081_v14  }
 0x2e9   : > { %v1106_v63 = vpop.permute.xlu2 %1105 }
 0x2ea   : > { %v1167_v57 = vmul.f32 %v1106_v63, %v1946_v34 }
 0x2f1   : > { %v1111_v44 = vpop.permute.xlu2 %1110 }
 0x2f2   : > { %v1168_v62 = vmul.f32 %v1111_v44, %v1954_v38 }
 0x2f9   : > { %v1126_v54 = vpop.permute.xlu2 %1125 }
 0x302   : > { %v1096_v9 = vpop.permute.xlu1 %1095 }
 0x303   : > { %v1086_v32 = vpop.permute.xlu0 %1085  ;;  %v1165_v7 = vmul.f32 %v1096_v9, %v1960_v41 }
 0x304   : > { %v1163_v18 = vmul.f32 %v1086_v32, %v1944_v33 }
 0x306   : > { %v2682_v8 = vpop.permute.xlu2 %1140 }
 0x30a   : > { %v1101_v22 = vpop.permute.xlu1 %1100 }
 0x30b   : > { %v1091_v50 = vpop.permute.xlu0 %1090 }
 0x30c   : > { %v1164_v61 = vmul.f32 %v1091_v50, %v1952_v37  ;;  %v1166_v37 = vmul.f32 %v1101_v22, %v1968_v45 }
 0x30e   : > { %v2684_v40 = vpop.permute.xlu2 %1155 }
 0x312   : > { %v1121_v31 = vpop.permute.xlu1 %1120 }
 0x313   : > { %v1170_v51 = vmul.f32 %v1121_v31, %v1970_v46  ;;  %v2915_v31 = vld [vmem:[#allocation4_spill] sm:$0xff] }
 0x316   : > { %v1187_v15 = vpop.permute.xlu2 %1186 }
 0x317   : > { %v1260_v52 = vadd.f32 %v1187_v15, %v1164_v61 }
 0x319   : > { %v1276_v29 = vmax.f32 %v1260_v52, 0.0  ;;  %v1116_v49 = vpop.permute.xlu0 %1115 }
 0x31a   : > { %v1169_v33 = vmul.f32 %v1116_v49, %v1962_v42  ;;  %v1171_v42 = vmul.f32 %v1126_v54, %v1948_v35 }
 0x31b   : > { %1293 = vadd.xlane.f32.xlu0 %v1276_v29  ;;  %v2917_v29 = vld [vmem:[#allocation5_spill] sm:$0xff] }
 0x31e   : > { %v1202_v30 = vpop.permute.xlu2 %1201 }
 0x31f   : > { %v1263_v17 = vadd.f32 %v1202_v30, %v1167_v57  ;;  %v1357_v30 = vstv %s1714_s16 }
 0x320   : > { %v1136_v47 = vpop.permute.xlu1 %1135 }
 0x321   : > { %v1131_v6 = vpop.permute.xlu0 %1130  ;;  %v1279_v23 = vmax.f32 %v1263_v17, 0.0  ;;  %v1173_v3 = vmul.f32 %v1136_v47, %v1964_v43  ;;  %v2916_v43 = vld [vmem:[#allocation7_spill] sm:$0xff] }
 0x322   : > { %v1172_v34 = vmul.f32 %v1131_v6, %v1956_v39  ;;  %v2914_v39 = vld [vmem:[#allocation6_spill] sm:$0xff]  ;;  %v1344_v17 = vld [vmem:[%s2878_s4 + $0x18] sm:$0xff] }
 0x323   : > { %v1174_v63 = vmul.f32 %v2682_v8, %v2914_v39  ;;  %v1177_v8 = vmul.f32 %v2684_v40, %v2917_v29  ;;  %v1342_v40 = vld [vmem:[%s2878_s4 + $0x8] sm:$0xff] }
 0x326   : > { %v1217_v2 = vpop.permute.xlu2 %1216 }
 0x327   : > { %v1266_v58 = vadd.f32 %v1217_v2, %v1170_v51 }
 0x328   : > { %v1151_v0 = vpop.permute.xlu1 %1150 }
 0x329   : > { %v1146_v24 = vpop.permute.xlu0 %1145  ;;  %v1282_v1 = vmax.f32 %v1266_v58, 0.0  ;;  %v1176_v15 = vmul.f32 %v1151_v0, %v2915_v31  ;;  %v1339_v0 = vlaneseq }
 0x32a   : > { %v1175_v46 = vmul.f32 %v1146_v24, %v1950_v36 }
 0x32e   : > { %v1232_v56 = vpop.permute.xlu2 %1231 }
 0x32f   : > { %v1269_v14 = vadd.f32 %v1232_v56, %v1173_v3 }
 0x330   : > { %v1182_v10 = vpop.permute.xlu1 %1181 }
 0x331   : > { %v1161_v26 = vpop.permute.xlu0 %1160  ;;  %v1259_v11 = vadd.f32 %v1182_v10, %v1163_v18  ;;  %v1285_v32 = vmax.f32 %v1269_v14, 0.0 }
 0x332   : > { %v1178_v36 = vmul.f32 %v1161_v26, %v2916_v43 }
 0x333   : > { %v1275_v59 = vmax.f32 %v1259_v11, 0.0 }
 0x335   : > { %1291 = vadd.xlane.f32.xlu2 %v1275_v59  ;;  %v1340_v59 = vand.u32 127, %v1339_v0 }
 0x336   : > { %v1247_v50 = vpop.permute.xlu2 %1246 }
 0x337   : > { %v1272_v52 = vadd.f32 %v1247_v50, %v1176_v15  ;;  %vm2705_vm10 = vcmp.eq.s32.totalorder %v1340_v59, %v1357_v30 }
 0x338   : > { %v1197_v21 = vpop.permute.xlu1 %1196 }
 0x339   : > { %v1192_v53 = vpop.permute.xlu0 %1191  ;;  %v1262_v28 = vadd.f32 %v1197_v21, %v1166_v37  ;;  %v1288_v18 = vmax.f32 %v1272_v52, 0.0 }
 0x33a   : > { %v1261_v48 = vadd.f32 %v1192_v53, %v1165_v7 }
 0x33b   : > { %v1278_v20 = vmax.f32 %v1262_v28, 0.0 }
 0x33c   : > { %v1277_v12 = vmax.f32 %v1261_v48, 0.0  ;;  %v1341_v48 = vld [vmem:[%s2878_s4] sm:$0xff] }
 0x33d   : > { %1297 = vadd.xlane.f32.xlu2 %v1278_v20 }
 0x33e   : > { %1295 = vadd.xlane.f32.xlu1 %v1277_v12 }
 0x340   : > { %v1212_v16 = vpop.permute.xlu1 %1211 }
 0x341   : > { %v1207_v45 = vpop.permute.xlu0 %1206  ;;  %v1265_v60 = vadd.f32 %v1212_v16, %v1169_v33  ;;  %v1343_v16 = vld [vmem:[%s2878_s4 + $0x10] sm:$0xff] }
 0x342   : > { %v1264_v41 = vadd.f32 %v1207_v45, %v1168_v62 }
 0x343   : > { %v1281_v55 = vmax.f32 %v1265_v60, 0.0 }
 0x344   : > { %v1280_v13 = vmax.f32 %v1264_v41, 0.0 }
 0x345   : > { %1299 = vadd.xlane.f32.xlu2 %v1279_v23 }
 0x346   : > { %1301 = vadd.xlane.f32.xlu0 %v1280_v13  ;;  %1303 = vadd.xlane.f32.xlu1 %v1281_v55 }
 0x348   : > { %v1227_v25 = vpop.permute.xlu1 %1226 }
 0x349   : > { %v1222_v38 = vpop.permute.xlu0 %1221  ;;  %v1268_v5 = vadd.f32 %v1227_v25, %v1172_v34  ;;  %v1345_v34 = vld [vmem:[%s2878_s4 + $0x20] sm:$0xff]  ;;  %v1346_v25 = vld [vmem:[%s2878_s4 + $0x28] sm:$0xff] }
 0x34a   : > { %v1267_v19 = vadd.f32 %v1222_v38, %v1171_v42 }
 0x34b   : > { %v1284_v27 = vmax.f32 %v1268_v5, 0.0  ;;  %v1347_v5 = vld [vmem:[%s2878_s4 + $0x30] sm:$0xff] }
 0x34c   : > { %v1283_v4 = vmax.f32 %v1267_v19, 0.0 }
 0x34d   : > { %1305 = vadd.xlane.f32.xlu2 %v1282_v1 }
 0x34e   : > { %1307 = vadd.xlane.f32.xlu0 %v1283_v4  ;;  %1309 = vadd.xlane.f32.xlu1 %v1284_v27 }
 0x350   : > { %v1242_v35 = vpop.permute.xlu1 %1241 }
 0x351   : > { %v1237_v44 = vpop.permute.xlu0 %1236  ;;  %v1271_v54 = vadd.f32 %v1242_v35, %v1175_v46 }
 0x352   : > { %v1270_v9 = vadd.f32 %v1237_v44, %v1174_v63  ;;  %v1348_v63 = vld [vmem:[%s2878_s4 + $0x38] sm:$0xff] }
 0x353   : > { %v1287_v22 = vmax.f32 %v1271_v54, 0.0  ;;  %v1349_v54 = vld [vmem:[%s2878_s4 + $0x40] sm:$0xff] }
 0x354   : > { %v1286_v61 = vmax.f32 %v1270_v9, 0.0 }
 0x355   : > { %1311 = vadd.xlane.f32.xlu2 %v1285_v32  ;;  %v1350_v32 = vld [vmem:[%s2878_s4 + $0x48] sm:$0xff] }
 0x356   : > { %1313 = vadd.xlane.f32.xlu0 %v1286_v61  ;;  %1315 = vadd.xlane.f32.xlu1 %v1287_v22 }
 0x358   : > { %v1257_v49 = vpop.permute.xlu1 %1256 }
 0x359   : > { %v1252_v47 = vpop.permute.xlu0 %1251  ;;  %v1274_v6 = vadd.f32 %v1257_v49, %v1178_v36 }
 0x35a   : > { %v1273_v24 = vadd.f32 %v1252_v47, %v1177_v8  ;;  %v1351_v8 = vld [vmem:[%s2878_s4 + $0x50] sm:$0xff] }
 0x35b   : > { %v1290_v10 = vmax.f32 %v1274_v6, 0.0  ;;  %v1352_v6 = vld [vmem:[%s2878_s4 + $0x58] sm:$0xff] }
 0x35c   : > { %v1289_v11 = vmax.f32 %v1273_v24, 0.0 }
 0x35d   : > { %1317 = vadd.xlane.f32.xlu2 %v1288_v18  ;;  %v1353_v18 = vld [vmem:[%s2878_s4 + $0x60] sm:$0xff] }
 0x35e   : > { %1319 = vadd.xlane.f32.xlu0 %v1289_v11  ;;  %1321 = vadd.xlane.f32.xlu1 %v1290_v10 }
 0x38e   : > { %v1294_v26 = vpop.xlane.xlu0 %1293 }
 0x38f   : > { %v1324_v7 = vmul.f32 0.00390625, %v1294_v26 }
 0x391   : > { %v1360_v21 = vsel %vm2705_vm10, %v1324_v7, 0.0 }
 0x392   : > { %v1376_v53 = vadd.f32 %v1360_v21, %v1342_v40 }
 0x394   : > { %1393 = vst.msk [vmem:[%s2878_s4 + $0x8] sm:$0xff] %vm1391_vm11, %v1376_v53  ;;  %v1354_v53 = vld [vmem:[%s2878_s4 + $0x68] sm:$0xff] }
 0x3a8   : > { %v1292_v28 = vpop.xlane.xlu2 %1291 }
 0x3a9   : > { %v1323_v20 = vmul.f32 0.00390625, %v1292_v28 }
 0x3ab   : > { %v1359_v12 = vsel %vm2705_vm10, %v1323_v20, 0.0  ;;  %v1355_v20 = vld [vmem:[%s2878_s4 + $0x70] sm:$0xff] }
 0x3ac   : > { %v1375_v57 = vadd.f32 %v1359_v12, %v1341_v48 }
 0x3ae   : > { %1392 = vst.msk [vmem:[%s2878_s4] sm:$0xff] %vm1391_vm11, %v1375_v57  ;;  %v1356_v57 = vld [vmem:[%s2878_s4 + $0x78] sm:$0xff] }
 0x3b0   : > { %v1298_v33 = vpop.xlane.xlu2 %1297 }
 0x3b1   : > { %v1326_v62 = vmul.f32 0.00390625, %v1298_v33  ;;  %v1296_v2 = vpop.xlane.xlu1 %1295 }
 0x3b2   : > { %v1325_v45 = vmul.f32 0.00390625, %v1296_v2 }
 0x3b3   : > { %v1362_v60 = vsel %vm2705_vm10, %v1326_v62, 0.0 }
 0x3b4   : > { %v1378_v41 = vadd.f32 %v1362_v60, %v1344_v17  ;;  %v1361_v23 = vsel %vm2705_vm10, %v1325_v45, 0.0 }
 0x3b5   : > { %v1377_v55 = vadd.f32 %v1361_v23, %v1343_v16 }
 0x3b6   : > { %1395 = vst.msk [vmem:[%s2878_s4 + $0x18] sm:$0xff] %vm1391_vm11, %v1378_v41 }
 0x3b7   : > { %1394 = vst.msk [vmem:[%s2878_s4 + $0x10] sm:$0xff] %vm1391_vm11, %v1377_v55 }
 0x3b8   : > { %v1300_v13 = vpop.xlane.xlu2 %1299 }
 0x3b9   : > { %v1302_v51 = vpop.xlane.xlu0 %1301  ;;  %v1327_v58 = vmul.f32 0.00390625, %v1300_v13  ;;  %v1304_v42 = vpop.xlane.xlu1 %1303 }
 0x3ba   : > { %v1328_v38 = vmul.f32 0.00390625, %v1302_v51  ;;  %v1329_v56 = vmul.f32 0.00390625, %v1304_v42 }
 0x3bb   : > { %v1363_v19 = vsel %vm2705_vm10, %v1327_v58, 0.0 }
 0x3bc   : > { %v1364_v1 = vsel %vm2705_vm10, %v1328_v38, 0.0  ;;  %v1379_v27 = vadd.f32 %v1363_v19, %v1345_v34  ;;  %v1365_v4 = vsel %vm2705_vm10, %v1329_v56, 0.0 }
 0x3bd   : > { %v1380_v3 = vadd.f32 %v1364_v1, %v1346_v25  ;;  %v1381_v46 = vadd.f32 %v1365_v4, %v1347_v5 }
 0x3be   : > { %1396 = vst.msk [vmem:[%s2878_s4 + $0x20] sm:$0xff] %vm1391_vm11, %v1379_v27 }
 0x3bf   : > { %1397 = vst.msk [vmem:[%s2878_s4 + $0x28] sm:$0xff] %vm1391_vm11, %v1380_v3 }
 0x3c0   : > { %1398 = vst.msk [vmem:[%s2878_s4 + $0x30] sm:$0xff] %vm1391_vm11, %v1381_v46  ;;  %v1306_v14 = vpop.xlane.xlu2 %1305 }
 0x3c1   : > { %v1308_v39 = vpop.xlane.xlu0 %1307  ;;  %v1330_v35 = vmul.f32 0.00390625, %v1306_v14  ;;  %v1310_v44 = vpop.xlane.xlu1 %1309 }
 0x3c2   : > { %v1331_v9 = vmul.f32 0.00390625, %v1308_v39  ;;  %v1332_v22 = vmul.f32 0.00390625, %v1310_v44 }
 0x3c3   : > { %v1366_v50 = vsel %vm2705_vm10, %v1330_v35, 0.0 }
 0x3c4   : > { %v1367_v61 = vsel %vm2705_vm10, %v1331_v9, 0.0  ;;  %v1382_v31 = vadd.f32 %v1366_v50, %v1348_v63  ;;  %v1368_v15 = vsel %vm2705_vm10, %v1332_v22, 0.0 }
 0x3c5   : > { %v1383_v43 = vadd.f32 %v1367_v61, %v1349_v54  ;;  %v1384_v36 = vadd.f32 %v1368_v15, %v1350_v32 }
 0x3c6   : > { %1399 = vst.msk [vmem:[%s2878_s4 + $0x38] sm:$0xff] %vm1391_vm11, %v1382_v31 }
 0x3c7   : > { %1400 = vst.msk [vmem:[%s2878_s4 + $0x40] sm:$0xff] %vm1391_vm11, %v1383_v43 }
 0x3c8   : > { %1401 = vst.msk [vmem:[%s2878_s4 + $0x48] sm:$0xff] %vm1391_vm11, %v1384_v36  ;;  %v1312_v52 = vpop.xlane.xlu2 %1311 }
 0x3c9   : > { %v1314_v29 = vpop.xlane.xlu0 %1313  ;;  %v1333_v49 = vmul.f32 0.00390625, %v1312_v52  ;;  %v1316_v47 = vpop.xlane.xlu1 %1315 }
 0x3ca   : > { %v1334_v24 = vmul.f32 0.00390625, %v1314_v29  ;;  %v1335_v10 = vmul.f32 0.00390625, %v1316_v47 }
 0x3cb   : > { %v1369_v11 = vsel %vm2705_vm10, %v1333_v49, 0.0 }
 0x3cc   : > { %v1370_v0 = vsel %vm2705_vm10, %v1334_v24, 0.0  ;;  %v1385_v59 = vadd.f32 %v1369_v11, %v1351_v8  ;;  %v1371_v30 = vsel %vm2705_vm10, %v1335_v10, 0.0 }
 0x3cd   : > { %v1386_v26 = vadd.f32 %v1370_v0, %v1352_v6  ;;  %v1387_v40 = vadd.f32 %v1371_v30, %v1353_v18 }
 0x3ce   : > { %1402 = vst.msk [vmem:[%s2878_s4 + $0x50] sm:$0xff] %vm1391_vm11, %v1385_v59 }
 0x3cf   : > { %1403 = vst.msk [vmem:[%s2878_s4 + $0x58] sm:$0xff] %vm1391_vm11, %v1386_v26 }
 0x3d0   : > { %1404 = vst.msk [vmem:[%s2878_s4 + $0x60] sm:$0xff] %vm1391_vm11, %v1387_v40  ;;  %v1318_v7 = vpop.xlane.xlu2 %1317 }
 0x3d1   : > { %v1320_v21 = vpop.xlane.xlu0 %1319  ;;  %v1336_v28 = vmul.f32 0.00390625, %v1318_v7  ;;  %v1322_v48 = vpop.xlane.xlu1 %1321 }
 0x3d2   : > { %v1337_v12 = vmul.f32 0.00390625, %v1320_v21  ;;  %v1338_v33 = vmul.f32 0.00390625, %v1322_v48 }
 0x3d3   : > { %v1372_v17 = vsel %vm2705_vm10, %v1336_v28, 0.0 }
 0x3d4   : > { %v1373_v62 = vsel %vm2705_vm10, %v1337_v12, 0.0  ;;  %v1388_v2 = vadd.f32 %v1372_v17, %v1354_v53  ;;  %v1374_v16 = vsel %vm2705_vm10, %v1338_v33, 0.0 }
 0x3d5   : > { %v1389_v45 = vadd.f32 %v1373_v62, %v1355_v20  ;;  %v1390_v60 = vadd.f32 %v1374_v16, %v1356_v57 }
 0x3d6   : > { %1405 = vst.msk [vmem:[%s2878_s4 + $0x68] sm:$0xff] %vm1391_vm11, %v1388_v2 }
 0x3d7   : > { %1406 = vst.msk [vmem:[%s2878_s4 + $0x70] sm:$0xff] %vm1391_vm11, %v1389_v45 }
 0x3d8   : > { %1407 = vst.msk [vmem:[%s2878_s4 + $0x78] sm:$0xff] %vm1391_vm11, %v1390_v60 }
 0x3d9 PF: > { %s14_s21 = sadd.s32 1, %s1734_s21   ;;  %s2920_s15 = smov %s1722_s18 }
 0x3da   : > { %p11_p6 = scmp.ge.s32.totalorder %s14_s21, 18   ;;  %s2921_s16 = smov %s1726_s19 }
 0x3db   : > { %s2922_s17 = smov %s1730_s20  ;;  %s2923_s18 = smov %s2927_s22 }
 0x3dc   : > { %s2924_s19 = smov %s2931_s23  ;;  %s2925_s20 = smov %s2935_s24 }
 0x3dd   :  { %13 = sbr.rel (!%p11_p6) target bundleno = 4 (0x4), region = 78 }

</bundles_post_ra>
